<compile_context>
chip_gen: v7x
topology: tpu7x:2x2x1
jax: 0.10.0
libtpu: 0.0.40
codegen_flags: <defaults>
</compile_context>

<pallas_src>
import functools

import jax
import jax.numpy as jnp
from jax import lax
from jax.experimental import pallas as pl
from jax.experimental.pallas import tpu as pltpu

KSIZE = 4
STRIDE = 2
PAD = 1
EPS = 1e-5
VMEM_LIMIT = 32 * 1024 * 1024

# Per output parity p and 3-wide window offset a (on the pad-1 input), which deconv kernel tap
# applies.  None = that offset contributes nothing for that parity (each parity only touches a
# 2x2x2 subset of the 3x3x3 window).
_KMAP = ((3, 1, None), (None, 2, 0))


def _round_up(x, m):
    return (x + m - 1) // m * m


# ---------------------------------------------------------------------------
# Pallas kernels
# ---------------------------------------------------------------------------
def _deconv_stats_kernel(a0_ref, a1_ref, a2_ref, b_ref, bias_ref,
                         o_ref, psum_ref, psq_ref, *, kp):
    """One (n, d) step: 3 accumulated MXU matmuls (depth taps) + bias + BN partial sums.

    a*_ref   : (1, 1, R2, KP) bf16 pair-packed patches of padded planes d, d+1, d+2
    b_ref    : (3*KP, NC) bf16 phase-folded block-diagonal weights (one KP-row panel per depth tap)
    o_ref    : (1, 1, R2, NC) bf16 conv intermediate (lane-dense, NC = 2*8*Co)
    psum/psq : (8, NC) f32 per-step partial sums of (o - bias) and (o - bias)^2
    """
    acc = jnp.dot(a0_ref[0, 0], b_ref[0 * kp:1 * kp, :],
                  preferred_element_type=jnp.float32)
    acc += jnp.dot(a1_ref[0, 0], b_ref[1 * kp:2 * kp, :],
                   preferred_element_type=jnp.float32)
    acc += jnp.dot(a2_ref[0, 0], b_ref[2 * kp:3 * kp, :],
                   preferred_element_type=jnp.float32)
    o = acc + bias_ref[...]                                   # f32 (R2, NC), VPU
    o_bf = o.astype(jnp.bfloat16)
    o_ref[0, 0] = o_bf                                        # bf16 write-back, unmasked vst

    # BN partial sums of the *stored* (bf16-rounded) values, centered by the bias, so kernel-2
    # normalizes exactly the distribution these stats describe and var = E[c^2] - E[c]^2 does not
    # suffer large-mean cancellation.  No padding correction needed (every row is valid).
    c = o_bf.astype(jnp.float32) - bias_ref[...]
    s = jnp.sum(c, axis=0, keepdims=True)
    q = jnp.sum(c * c, axis=0, keepdims=True)
    # 8 identical sublanes keep the (8, NC) output block layout-legal; 4 KiB/step, negligible.
    psum_ref[...] = jnp.broadcast_to(s, psum_ref.shape)
    psq_ref[...] = jnp.broadcast_to(q, psq_ref.shape)


def _bn_apply_kernel(o_ref, scale_ref, shift_ref, y_ref):
    """Elementwise BatchNorm apply on the flat lane-dense view: y = o * scale + shift."""
    y_ref[...] = o_ref[...].astype(jnp.float32) * scale_ref[...] + shift_ref[...]


# ---------------------------------------------------------------------------
# Glue: pair-packed (dh, dw) patch expansion + phase-folded block-diagonal weights
# ---------------------------------------------------------------------------
def _build_pair_patches(x_relu, kp):
    """ReLU'd x (N, Ci, D, H, W) -> A (N, D+2, H*W/2, kp) bf16.

    Row r of padded plane d' packs the two output base positions m = 2r, 2r+1 (m = h*W + w); its
    columns are (j, dh, dw, ci) with j in {0, 1} selecting the position, zero-padded to kp lanes.
    Only a 9x (bf16) expansion of x -- the depth taps stay un-expanded (handled in-kernel).
    """
    n, ci, d, h, w = x_relu.shape
    x = jnp.transpose(x_relu, (0, 2, 3, 4, 1)).astype(jnp.bfloat16)       # (N,D,H,W,Ci)
    xp = jnp.pad(x, ((0, 0), (1, 1), (1, 1), (1, 1), (0, 0)))             # (N,D+2,H+2,W+2,Ci)
    wins = []
    for dh in range(3):
        for dw in range(3):
            wins.append(xp[:, :, dh:dh + h, dw:dw + w, :])                # (N,D+2,H,W,Ci)
    a = jnp.stack(wins, axis=-2)                                          # (N,D+2,H,W,9,Ci)
    a = a.reshape(n, d + 2, h * w, 9 * ci)
    a = a.reshape(n, d + 2, (h * w) // 2, 2 * 9 * ci)                     # pair-pack rows
    return jnp.pad(a, ((0, 0), (0, 0), (0, 0), (0, kp - 2 * 9 * ci)))


def _build_weight_matrix(w_t, kp):
    """PyTorch ConvTranspose3d weight (Ci, Co, 4, 4, 4) -> (3*kp, 16*Co) bf16.

    Three stacked (kp, 16*Co) panels, one per depth tap da.  Each panel is block-diagonal over the
    pair index j (so one matmul emits 2*8*Co lane-dense columns); rows are ordered (dh, dw, ci),
    columns (j, pd, ph, pw, co).  Invalid (parity, offset) pairs are zero.
    """
    ci, co = w_t.shape[0], w_t.shape[1]
    w_cl = jnp.transpose(w_t, (2, 3, 4, 0, 1)).astype(jnp.bfloat16)       # (kd,kh,kw,Ci,Co)
    zero = jnp.zeros((ci, co), jnp.bfloat16)
    panels = []
    for da in range(3):
        cols = []
        for pd in range(2):
            for ph in range(2):
                for pw in range(2):
                    rows = []
                    for dh in range(3):
                        for dw in range(3):
                            kd, kh, kw = _KMAP[pd][da], _KMAP[ph][dh], _KMAP[pw][dw]
                            if kd is None or kh is None or kw is None:
                                rows.append(zero)
                            else:
                                rows.append(w_cl[kd, kh, kw])
                    cols.append(jnp.concatenate(rows, axis=0))            # (9*Ci, Co)
        b1 = jnp.concatenate(cols, axis=1)                                # (9*Ci, 8*Co)
        k1 = b1.shape[0]
        zblk = jnp.zeros_like(b1)
        b2 = jnp.concatenate(
            [jnp.concatenate([b1, zblk], axis=1),
             jnp.concatenate([zblk, b1], axis=1)], axis=0)                # (2*9*Ci, 16*Co)
        panels.append(jnp.pad(b2, ((0, kp - 2 * k1), (0, 0))))            # (kp, 16*Co)
    return jnp.concatenate(panels, axis=0)                                # (3*kp, 16*Co)


def _pick_rows_tile(m2, cap=512):
    """Largest multiple-of-8 divisor of m2 that is <= cap and keeps the grid >= 2 steps."""
    best = None
    for cand in range(8, min(cap, m2) + 1, 8):
        if m2 % cand == 0 and m2 // cand >= 2:
            best = cand
    return best if best is not None else m2


# ---------------------------------------------------------------------------
# DecoderBlock forward (wrapper around the two pallas_calls)
# ---------------------------------------------------------------------------
def decoder_block_forward(x_ncdhw, w_t, bias, gamma, beta):
    n, ci, d, h, w = x_ncdhw.shape
    co = w_t.shape[1]
    assert (h * w) % 2 == 0, "pair-packing needs an even number of spatial positions per plane"

    r2 = (h * w) // 2                       # matmul rows per (n, d) step (pairs of positions)
    nc = 2 * 8 * co                         # lane-dense output columns: (j, pd, ph, pw, co)
    kp = _round_up(2 * 9 * ci, 128)         # contraction dim: pair-packed (dh, dw, ci) taps

    # ReLU once in the wrapper (commutes with the zero padding of the patch build).
    a_pl = _build_pair_patches(jnp.maximum(x_ncdhw, 0.0), kp)   # (N, D+2, R2, KP) bf16
    b_all = _build_weight_matrix(w_t, kp)                       # (3*KP, NC) bf16
    bias_cols = jnp.tile(bias.astype(jnp.float32), 2 * 8).reshape(1, nc)

    num_steps = n * d
    conv_flops = 2 * 3 * num_steps * r2 * kp * nc
    conv_bytes = ((3 * num_steps * r2 * kp + 3 * kp * nc + num_steps * r2 * nc) * 2
                  + (2 * num_steps * 8 * nc + nc) * 4)

    # Kernel 1: deconv as three accumulated matmuls over overlapping depth planes (halo via
    # index_map), bias, bf16 conv intermediate, and centered BN partial sums.  Grid (N, D),
    # both axes parallel (no cross-step accumulation).
    conv_out, psum, psq = pl.pallas_call(
        functools.partial(_deconv_stats_kernel, kp=kp),
        grid=(n, d),
        in_specs=[
            pl.BlockSpec((1, 1, r2, kp), lambda i, j: (i, j, 0, 0)),
            pl.BlockSpec((1, 1, r2, kp), lambda i, j: (i, j + 1, 0, 0)),
            pl.BlockSpec((1, 1, r2, kp), lambda i, j: (i, j + 2, 0, 0)),
            pl.BlockSpec((3 * kp, nc), lambda i, j: (0, 0)),
            pl.BlockSpec((1, nc), lambda i, j: (0, 0)),
        ],
        out_specs=(
            pl.BlockSpec((1, 1, r2, nc), lambda i, j: (i, j, 0, 0)),
            pl.BlockSpec((8, nc), lambda i, j: (i * d + j, 0)),
            pl.BlockSpec((8, nc), lambda i, j: (i * d + j, 0)),
        ),
        out_shape=(
            jax.ShapeDtypeStruct((n, d, r2, nc), jnp.bfloat16),
            jax.ShapeDtypeStruct((num_steps * 8, nc), jnp.float32),
            jax.ShapeDtypeStruct((num_steps * 8, nc), jnp.float32),
        ),
        compiler_params=pltpu.CompilerParams(
            dimension_semantics=("parallel", "parallel"),
            vmem_limit_bytes=VMEM_LIMIT),
        cost_estimate=pl.CostEstimate(
            flops=conv_flops, transcendentals=0, bytes_accessed=conv_bytes),
    )(a_pl, a_pl, a_pl, b_all, bias_cols)

    # BatchNorm3d batch statistics (training mode), per output channel.  Sums are of (o - bias).
    csum = jnp.sum(psum[0::8], axis=0)                          # (NC,)
    csq = jnp.sum(psq[0::8], axis=0)
    count = 8.0 * n * d * h * w                                 # = N * OD * OH * OW
    sum_co = csum.reshape(2 * 8, co).sum(axis=0)
    sq_co = csq.reshape(2 * 8, co).sum(axis=0)
    mean_c = sum_co / count                                     # E[o - bias]
    var = sq_co / count - mean_c * mean_c                       # biased var (PyTorch BN fwd)
    scale_co = gamma.astype(jnp.float32) * lax.rsqrt(var + EPS)
    shift_co = beta.astype(jnp.float32) - (mean_c + bias.astype(jnp.float32)) * scale_co
    scale_cols = jnp.tile(scale_co, 2 * 8).reshape(1, nc)
    shift_cols = jnp.tile(shift_co, 2 * 8).reshape(1, nc)

    # Kernel 2: elementwise normalize + affine on the flat lane-dense (M2, 128) view.
    m2 = num_steps * r2
    tm2 = _pick_rows_tile(m2)
    y2 = pl.pallas_call(
        _bn_apply_kernel,
        grid=(m2 // tm2,),
        in_specs=[
            pl.BlockSpec((tm2, nc), lambda i: (i, 0)),
            pl.BlockSpec((1, nc), lambda i: (0, 0)),
            pl.BlockSpec((1, nc), lambda i: (0, 0)),
        ],
        out_specs=pl.BlockSpec((tm2, nc), lambda i: (i, 0)),
        out_shape=jax.ShapeDtypeStruct((m2, nc), jnp.float32),
        compiler_params=pltpu.CompilerParams(
            dimension_semantics=("parallel",), vmem_limit_bytes=VMEM_LIMIT),
        cost_estimate=pl.CostEstimate(
            flops=2 * m2 * nc, transcendentals=0,
            bytes_accessed=m2 * nc * (2 + 4) + 2 * nc * 4),
    )(conv_out.reshape(m2, nc), scale_cols, shift_cols)

    # Single-pass epilogue: (n, d, h, w, pd, ph, pw, co) phase-folded layout -> NCDHW.
    y = y2.reshape(n, d, h, w, 2, 2, 2, co)
    y = jnp.transpose(y, (0, 7, 1, 4, 2, 5, 3, 6))
    return y.reshape(n, co, 2 * d, 2 * h, 2 * w)


# ---------------------------------------------------------------------------
# Pure-JAX reference (for correctness check)
# ---------------------------------------------------------------------------
def decoder_block_reference(x_ncdhw, w_t, bias, gamma, beta):
    fx = jnp.maximum(x_ncdhw, 0.0)
    # ConvTranspose3d == lhs-dilated conv with flipped kernel, pad = k-1-p.
    w_conv = jnp.transpose(w_t[:, :, ::-1, ::-1, ::-1], (1, 0, 2, 3, 4))  # (Co, Ci, kD, kH, kW)
    p = KSIZE - 1 - PAD
    out = lax.conv_general_dilated(
        fx, w_conv,
        window_strides=(1, 1, 1),
        padding=[(p, p)] * 3,
        lhs_dilation=(STRIDE,) * 3,
        dimension_numbers=("NCDHW", "OIDHW", "NCDHW"),
    )
    out = out + bias.reshape(1, -1, 1, 1, 1)
    mean = jnp.mean(out, axis=(0, 2, 3, 4), keepdims=True)
    var = jnp.mean((out - mean) ** 2, axis=(0, 2, 3, 4), keepdims=True)
    out = (out - mean) * lax.rsqrt(var + EPS)
    return out * gamma.reshape(1, -1, 1, 1, 1) + beta.reshape(1, -1, 1, 1, 1)


# ---------------------------------------------------------------------------
if __name__ == "__main__":
    key = jax.random.PRNGKey(0)
    k_x, k_w, k_b, k_g, k_be = jax.random.split(key, 5)

    N, CI, CO = 2, 4, 8
    D = H = W = 12  # output spatial = 24; grid = (2, 12) = 24 fully parallel steps

    x = jax.random.normal(k_x, (N, CI, D, H, W), dtype=jnp.float32)
    w_t = 0.1 * jax.random.normal(k_w, (CI, CO, KSIZE, KSIZE, KSIZE), dtype=jnp.float32)
    bias = 0.1 * jax.random.normal(k_b, (CO,), dtype=jnp.float32)
    gamma = 1.0 + 0.2 * jax.random.normal(k_g, (CO,), dtype=jnp.float32)
    beta = 0.1 * jax.random.normal(k_be, (CO,), dtype=jnp.float32)

    fwd = jax.jit(decoder_block_forward)
    y = jax.block_until_ready(fwd(x, w_t, bias, gamma, beta))
    assert y.shape == (N, CO, STRIDE * D, STRIDE * H, STRIDE * W), y.shape

    y_ref = jax.block_until_ready(decoder_block_reference(x, w_t, bias, gamma, beta))
    max_err = float(jnp.max(jnp.abs(y - y_ref)))
    # bf16 MXU operands + bf16 conv intermediate -> slightly looser tolerance than pure f32.
    assert jnp.allclose(y, y_ref, atol=3e-2, rtol=3e-2), max_err

    print("KERNEL_OK")
</pallas_src>

<mosaic_0001>
module attributes {stable_mosaic.version = 11 : i64} {
  func.func @_deconv_stats_kernel(%arg0: i32, %arg1: i32, %arg2: memref<1x1x72x128xbf16, #tpu.memory_space<vmem>>, %arg3: memref<1x1x72x128xbf16, #tpu.memory_space<vmem>>, %arg4: memref<1x1x72x128xbf16, #tpu.memory_space<vmem>>, %arg5: memref<384x128xbf16, #tpu.memory_space<vmem>>, %arg6: memref<1x128xf32, #tpu.memory_space<vmem>>, %arg7: memref<1x1x72x128xbf16, #tpu.memory_space<vmem>>, %arg8: memref<8x128xf32, #tpu.memory_space<vmem>>, %arg9: memref<8x128xf32, #tpu.memory_space<vmem>>) attributes {dimension_semantics = [#tpu.dimension_semantics<parallel>, #tpu.dimension_semantics<parallel>], iteration_bounds = array<i64: 2, 12>, scalar_prefetch = 0 : i64, scratch_operands = 0 : i64, tpu.core_type = #tpu.core_type<tc>, window_params = [{transform_indices = @transform_0, window_bounds = array<i64: 1, 1, 72, 128>}, {transform_indices = @transform_1, window_bounds = array<i64: 1, 1, 72, 128>}, {transform_indices = @transform_2, window_bounds = array<i64: 1, 1, 72, 128>}, {pipeline_mode = #tpu.pipeline_mode<synchronous>, transform_indices = @transform_3, window_bounds = array<i64: 384, 128>}, {pipeline_mode = #tpu.pipeline_mode<synchronous>, transform_indices = @transform_4, window_bounds = array<i64: 1, 128>}, {transform_indices = @transform_5, window_bounds = array<i64: 1, 1, 72, 128>}, {transform_indices = @transform_6, window_bounds = array<i64: 8, 128>}, {transform_indices = @transform_7, window_bounds = array<i64: 8, 128>}]} {
    %c0 = arith.constant 0 : index
    %c0_0 = arith.constant 0 : index
    %c0_1 = arith.constant 0 : index
    %c0_2 = arith.constant 0 : index
    %0 = vector.load %arg2[%c0, %c0_0, %c0_1, %c0_2] : memref<1x1x72x128xbf16, #tpu.memory_space<vmem>>, vector<1x1x72x128xbf16>
    %1 = vector.shape_cast %0 : vector<1x1x72x128xbf16> to vector<72x128xbf16>
    %c0_3 = arith.constant 0 : index
    %c0_4 = arith.constant 0 : index
    %2 = vector.load %arg5[%c0_3, %c0_4] : memref<384x128xbf16, #tpu.memory_space<vmem>>, vector<128x128xbf16>
    %cst = arith.constant dense<0.000000e+00> : vector<72x128xf32>
    %3 = tpu.matmul %1, %2, %cst {dimension_numbers = #tpu.dot_dimension_numbers<[1], [0], [0], [1], [0, 0, 1, 1], [], []>} : vector<72x128xbf16>, vector<128x128xbf16>, vector<72x128xf32> -> vector<72x128xf32>
    %c0_5 = arith.constant 0 : index
    %c0_6 = arith.constant 0 : index
    %c0_7 = arith.constant 0 : index
    %c0_8 = arith.constant 0 : index
    %4 = vector.load %arg3[%c0_5, %c0_6, %c0_7, %c0_8] : memref<1x1x72x128xbf16, #tpu.memory_space<vmem>>, vector<1x1x72x128xbf16>
    %5 = vector.shape_cast %4 : vector<1x1x72x128xbf16> to vector<72x128xbf16>
    %c128 = arith.constant 128 : index
    %c0_9 = arith.constant 0 : index
    %6 = vector.load %arg5[%c128, %c0_9] : memref<384x128xbf16, #tpu.memory_space<vmem>>, vector<128x128xbf16>
    %cst_10 = arith.constant dense<0.000000e+00> : vector<72x128xf32>
    %7 = tpu.matmul %5, %6, %cst_10 {dimension_numbers = #tpu.dot_dimension_numbers<[1], [0], [0], [1], [0, 0, 1, 1], [], []>} : vector<72x128xbf16>, vector<128x128xbf16>, vector<72x128xf32> -> vector<72x128xf32>
    %8 = arith.addf %3, %7 : vector<72x128xf32>
    %c0_11 = arith.constant 0 : index
    %c0_12 = arith.constant 0 : index
    %c0_13 = arith.constant 0 : index
    %c0_14 = arith.constant 0 : index
    %9 = vector.load %arg4[%c0_11, %c0_12, %c0_13, %c0_14] : memref<1x1x72x128xbf16, #tpu.memory_space<vmem>>, vector<1x1x72x128xbf16>
    %10 = vector.shape_cast %9 : vector<1x1x72x128xbf16> to vector<72x128xbf16>
    %c256 = arith.constant 256 : index
    %c0_15 = arith.constant 0 : index
    %11 = vector.load %arg5[%c256, %c0_15] : memref<384x128xbf16, #tpu.memory_space<vmem>>, vector<128x128xbf16>
    %cst_16 = arith.constant dense<0.000000e+00> : vector<72x128xf32>
    %12 = tpu.matmul %10, %11, %cst_16 {dimension_numbers = #tpu.dot_dimension_numbers<[1], [0], [0], [1], [0, 0, 1, 1], [], []>} : vector<72x128xbf16>, vector<128x128xbf16>, vector<72x128xf32> -> vector<72x128xf32>
    %13 = arith.addf %8, %12 : vector<72x128xf32>
    %c0_17 = arith.constant 0 : index
    %c0_18 = arith.constant 0 : index
    %14 = vector.load %arg6[%c0_17, %c0_18] : memref<1x128xf32, #tpu.memory_space<vmem>>, vector<1x128xf32>
    %15 = vector.broadcast %14 : vector<1x128xf32> to vector<72x128xf32>
    %16 = arith.addf %13, %15 : vector<72x128xf32>
    %17 = arith.truncf %16 : vector<72x128xf32> to vector<72x128xbf16>
    %c0_19 = arith.constant 0 : index
    %c0_20 = arith.constant 0 : index
    %c0_21 = arith.constant 0 : index
    %c0_22 = arith.constant 0 : index
    %18 = vector.load %arg7[%c0_19, %c0_20, %c0_21, %c0_22] : memref<1x1x72x128xbf16, #tpu.memory_space<vmem>>, vector<1x1x72x128xbf16>
    %19 = vector.shape_cast %18 : vector<1x1x72x128xbf16> to vector<72x128xbf16>
    %20 = vector.shape_cast %17 : vector<72x128xbf16> to vector<1x1x72x128xbf16>
    tpu.vector_store %arg7[%c0_19, %c0_20, %c0_21, %c0_22], %20 {strides = array<i32>} : memref<1x1x72x128xbf16, #tpu.memory_space<vmem>>, vector<1x1x72x128xbf16>,
    %21 = arith.extf %17 : vector<72x128xbf16> to vector<72x128xf32>
    %c0_23 = arith.constant 0 : index
    %c0_24 = arith.constant 0 : index
    %22 = vector.load %arg6[%c0_23, %c0_24] : memref<1x128xf32, #tpu.memory_space<vmem>>, vector<1x128xf32>
    %23 = vector.broadcast %22 : vector<1x128xf32> to vector<72x128xf32>
    %24 = arith.subf %21, %23 : vector<72x128xf32>
    %cst_25 = arith.constant dense<0.000000e+00> : vector<128xf32>
    %25 = vector.multi_reduction <add>, %24, %cst_25 [0] : vector<72x128xf32> to vector<128xf32>
    %26 = vector.shape_cast %25 : vector<128xf32> to vector<1x128xf32>
    %27 = arith.mulf %24, %24 : vector<72x128xf32>
    %cst_26 = arith.constant dense<0.000000e+00> : vector<128xf32>
    %28 = vector.multi_reduction <add>, %27, %cst_26 [0] : vector<72x128xf32> to vector<128xf32>
    %29 = vector.shape_cast %28 : vector<128xf32> to vector<1x128xf32>
    %30 = vector.shape_cast %26 : vector<1x128xf32> to vector<1x128xf32>
    %31 = vector.broadcast %30 : vector<1x128xf32> to vector<8x128xf32>
    %c0_27 = arith.constant 0 : index
    %c0_28 = arith.constant 0 : index
    %32 = vector.load %arg8[%c0_27, %c0_28] : memref<8x128xf32, #tpu.memory_space<vmem>>, vector<8x128xf32>
    tpu.vector_store %arg8[%c0_27, %c0_28], %31 {strides = array<i32>} : memref<8x128xf32, #tpu.memory_space<vmem>>, vector<8x128xf32>,
    %33 = vector.shape_cast %29 : vector<1x128xf32> to vector<1x128xf32>
    %34 = vector.broadcast %33 : vector<1x128xf32> to vector<8x128xf32>
    %c0_29 = arith.constant 0 : index
    %c0_30 = arith.constant 0 : index
    %35 = vector.load %arg9[%c0_29, %c0_30] : memref<8x128xf32, #tpu.memory_space<vmem>>, vector<8x128xf32>
    tpu.vector_store %arg9[%c0_29, %c0_30], %34 {strides = array<i32>} : memref<8x128xf32, #tpu.memory_space<vmem>>, vector<8x128xf32>,
    return
  }
  func.func @transform_0(%arg0: i32, %arg1: i32) -> (i32, i32, i32, i32) {
    %c0_i32 = arith.constant 0 : i32
    %c0_i32_0 = arith.constant 0 : i32
    %c0_i32_1 = arith.constant 0 : i32
    return %arg0, %arg1, %c0_i32, %c0_i32_0 : i32, i32, i32, i32
  }
  func.func @transform_1(%arg0: i32, %arg1: i32) -> (i32, i32, i32, i32) {
    %c1_i32 = arith.constant 1 : i32
    %0 = arith.addi %arg1, %c1_i32 : i32
    %c0_i32 = arith.constant 0 : i32
    %c0_i32_0 = arith.constant 0 : i32
    %c0_i32_1 = arith.constant 0 : i32
    return %arg0, %0, %c0_i32, %c0_i32_0 : i32, i32, i32, i32
  }
  func.func @transform_2(%arg0: i32, %arg1: i32) -> (i32, i32, i32, i32) {
    %c2_i32 = arith.constant 2 : i32
    %0 = arith.addi %arg1, %c2_i32 : i32
    %c0_i32 = arith.constant 0 : i32
    %c0_i32_0 = arith.constant 0 : i32
    %c0_i32_1 = arith.constant 0 : i32
    return %arg0, %0, %c0_i32, %c0_i32_0 : i32, i32, i32, i32
  }
  func.func @transform_3(%arg0: i32, %arg1: i32) -> (i32, i32) {
    %c0_i32 = arith.constant 0 : i32
    %c0_i32_0 = arith.constant 0 : i32
    %c0_i32_1 = arith.constant 0 : i32
    return %c0_i32, %c0_i32_0 : i32, i32
  }
  func.func @transform_4(%arg0: i32, %arg1: i32) -> (i32, i32) {
    %c0_i32 = arith.constant 0 : i32
    %c0_i32_0 = arith.constant 0 : i32
    %c0_i32_1 = arith.constant 0 : i32
    return %c0_i32, %c0_i32_0 : i32, i32
  }
  func.func @transform_5(%arg0: i32, %arg1: i32) -> (i32, i32, i32, i32) {
    %c0_i32 = arith.constant 0 : i32
    %c0_i32_0 = arith.constant 0 : i32
    %c0_i32_1 = arith.constant 0 : i32
    return %arg0, %arg1, %c0_i32, %c0_i32_0 : i32, i32, i32, i32
  }
  func.func @transform_6(%arg0: i32, %arg1: i32) -> (i32, i32) {
    %c12_i32 = arith.constant 12 : i32
    %0 = arith.muli %arg0, %c12_i32 : i32
    %1 = arith.addi %0, %arg1 : i32
    %c0_i32 = arith.constant 0 : i32
    %c0_i32_0 = arith.constant 0 : i32
    return %1, %c0_i32 : i32, i32
  }
  func.func @transform_7(%arg0: i32, %arg1: i32) -> (i32, i32) {
    %c12_i32 = arith.constant 12 : i32
    %0 = arith.muli %arg0, %c12_i32 : i32
    %1 = arith.addi %0, %arg1 : i32
    %c0_i32 = arith.constant 0 : i32
    %c0_i32_0 = arith.constant 0 : i32
    return %1, %c0_i32 : i32, i32
  }
}

module attributes {stable_mosaic.version = 11 : i64} {
  func.func @_bn_apply_kernel(%arg0: i32, %arg1: memref<432x128xbf16, #tpu.memory_space<vmem>>, %arg2: memref<1x128xf32, #tpu.memory_space<vmem>>, %arg3: memref<1x128xf32, #tpu.memory_space<vmem>>, %arg4: memref<432x128xf32, #tpu.memory_space<vmem>>) attributes {dimension_semantics = [#tpu.dimension_semantics<parallel>], iteration_bounds = array<i64: 4>, scalar_prefetch = 0 : i64, scratch_operands = 0 : i64, tpu.core_type = #tpu.core_type<tc>, window_params = [{transform_indices = @transform_0, window_bounds = array<i64: 432, 128>}, {pipeline_mode = #tpu.pipeline_mode<synchronous>, transform_indices = @transform_1, window_bounds = array<i64: 1, 128>}, {pipeline_mode = #tpu.pipeline_mode<synchronous>, transform_indices = @transform_2, window_bounds = array<i64: 1, 128>}, {transform_indices = @transform_3, window_bounds = array<i64: 432, 128>}]} {
    %c0 = arith.constant 0 : index
    %c0_0 = arith.constant 0 : index
    %0 = vector.load %arg1[%c0, %c0_0] : memref<432x128xbf16, #tpu.memory_space<vmem>>, vector<432x128xbf16>
    %1 = arith.extf %0 : vector<432x128xbf16> to vector<432x128xf32>
    %c0_1 = arith.constant 0 : index
    %c0_2 = arith.constant 0 : index
    %2 = vector.load %arg2[%c0_1, %c0_2] : memref<1x128xf32, #tpu.memory_space<vmem>>, vector<1x128xf32>
    %3 = vector.broadcast %2 : vector<1x128xf32> to vector<432x128xf32>
    %4 = arith.mulf %1, %3 : vector<432x128xf32>
    %c0_3 = arith.constant 0 : index
    %c0_4 = arith.constant 0 : index
    %5 = vector.load %arg3[%c0_3, %c0_4] : memref<1x128xf32, #tpu.memory_space<vmem>>, vector<1x128xf32>
    %6 = vector.broadcast %5 : vector<1x128xf32> to vector<432x128xf32>
    %7 = arith.addf %4, %6 : vector<432x128xf32>
    %c0_5 = arith.constant 0 : index
    %c0_6 = arith.constant 0 : index
    %8 = vector.load %arg4[%c0_5, %c0_6] : memref<432x128xf32, #tpu.memory_space<vmem>>, vector<432x128xf32>
    tpu.vector_store %arg4[%c0_5, %c0_6], %7 {strides = array<i32>} : memref<432x128xf32, #tpu.memory_space<vmem>>, vector<432x128xf32>,
    return
  }
  func.func @transform_0(%arg0: i32) -> (i32, i32) {
    %c0_i32 = arith.constant 0 : i32
    %c0_i32_0 = arith.constant 0 : i32
    return %arg0, %c0_i32 : i32, i32
  }
  func.func @transform_1(%arg0: i32) -> (i32, i32) {
    %c0_i32 = arith.constant 0 : i32
    %c0_i32_0 = arith.constant 0 : i32
    %c0_i32_1 = arith.constant 0 : i32
    return %c0_i32, %c0_i32_0 : i32, i32
  }
  func.func @transform_2(%arg0: i32) -> (i32, i32) {
    %c0_i32 = arith.constant 0 : i32
    %c0_i32_0 = arith.constant 0 : i32
    %c0_i32_1 = arith.constant 0 : i32
    return %c0_i32, %c0_i32_0 : i32, i32
  }
  func.func @transform_3(%arg0: i32) -> (i32, i32) {
    %c0_i32 = arith.constant 0 : i32
    %c0_i32_0 = arith.constant 0 : i32
    return %arg0, %c0_i32 : i32, i32
  }
}

</mosaic_0001>

<bundles_post_ra>
// kernel: tile.18
= control target key start
LH: loop header
LB: loop body
LE: loop exit
PB: predicated region body
PF: predicated region fallthrough
CT: control target
= control target key end

     0   :  { %2 = vsyncpa [#allocation1], 0  ;;  %s47_s6 = smov [#allocation0]   ;;  %s76_s0 = inlined_call_operand.hbm [shape: f32[8], index: 0, kind: input, shape index: {}]   ;;  %s77_s1 = inlined_call_operand.vmem [shape: f32[16,8], index: 1, kind: output, shape index: {}]  }
   0x1   :  { %s9_s7 = sshll.u32 %s47_s6, 4  ;;  %s23_s10 = scalar_lea.hbm %s76_s0, 16  ;;  %s10_s7 = int_to_ptr.vmem [resolvable:$true] %s9_s7 }
   0x2   :  { %p24_p0 = scmp.ne.s32.totalorder %s76_s0, %s23_s10  ;;  %p27_p1 = scmp.lt.u32.totalorder %s23_s10, %s76_s0 }
   0x4   :  { %p29_p2 = pnand %p27_p1, %p24_p0 }
   0x6   :  { %32 = shalt.err (!%p29_p2)
}
   0x7   :  { %s33_s15 = scalar_lea.vmem %s10_s7, 16  ;;  %s37_s16 = scalar_lea.vmem %s10_s7, 32 }
   0x8   :  { %p34_p3 = scmp.ne.s32.totalorder %s10_s7, %s33_s15  ;;  %p38_p4 = scmp.lt.s32.totalorder %s10_s7, %s10_s7 }
   0x9   :  { %p39_p5 = scmp.lt.s32.totalorder %s37_s16, %s33_s15 }
   0xb   :  { %p40_p6 = por %p39_p5, %p38_p4 }
   0xd   :  { %p41_p7 = pnand %p40_p6, %p34_p3 }
   0xf   :  { %44 = shalt.err (!%p41_p7)
}
  0x10   :  { %12 = dma.hbm_to_vmem [thread:$0]  %s76_s0, 16, %s10_s7, [#allocation1]  }
  0x11   :  { %45 = dma.done.wait [#allocation1], 16  }
  0x12   :  { %46 = vsyncadd [#allocation1], 4294967280  ;;  %v16_v0 = vld [vmem:[#allocation0] ss:$0 sm:$0xff] }
  0x13   :  { %17 = vst [vmem:[%s77_s1] sm:$0xff] %v16_v0  ;;  %21 = vst [vmem:[%s77_s1 + $0x8] sm:$0xff] %v16_v0 }
  0x14   :  { %20 = vsyncpa [#allocation1], 1 }

// kernel: tile.19
= control target key start
LH: loop header
LB: loop body
LE: loop exit
PB: predicated region body
PF: predicated region fallthrough
CT: control target
= control target key end

     0   :  { %s131_s10 = smov 120   ;;  %s132_s11 = smov 104   ;;  %vm3_vm0 = vcmask 64512   ;;  %vm9_vm1 = vcmask 1048512   ;;  %vm15_vm2 = vcmask 982912   ;;  %vm21_vm3 = vcmask 917312   ;;  %s207_s0 = inlined_call_operand.vmem [shape: f32[16,8], index: 0, kind: input, shape index: {}]   ;;  %s208_s1 = inlined_call_operand.vmem [shape: f32[1,128], index: 1, kind: output, shape index: {}]  }
   0x1   :  { %v101_v0 = vld [vmem:[%s207_s0 + $0xf] sm:$0x1]   ;;  %v103_v1 = vld [vmem:[%s207_s0 + $0xd] sm:$0x1]   ;;  %v102_v2 = vld [vmem:[%s207_s0 + $0xe] sm:$0x1]  }
   0x2   :  { %7 = vrot.lane.b32.xlu0 %v101_v0, %s131_s10  ;;  %19 = vrot.lane.b32.xlu1 %v103_v1, %s132_s11  ;;  %v104_v3 = vld [vmem:[%s207_s0 + $0xc] sm:$0x1]   ;;  %s133_s16 = smov 112   ;;  %s134_s17 = smov 96   ;;  %v105_v4 = vld [vmem:[%s207_s0 + $0xb] sm:$0x1]  }
   0x3   :  { %v106_v5 = vld [vmem:[%s207_s0 + $0xa] sm:$0x1]   ;;  %v2_v6 = vld [vmem:[%s207_s0] sm:$0x1]   ;;  %s135_s24 = smov 88   ;;  %s136_s25 = smov 80  }
   0x4   :  { %4 = vst.msk [vmem:[#allocation0] sm:$0x1] %vm3_vm0, %v2_v6   ;;  %v107_v7 = vld [vmem:[%s207_s0 + $0x9] sm:$0x1]   ;;  %v108_v8 = vld [vmem:[%s207_s0 + $0x8] sm:$0x1]  }
   0x5   :  { %s137_s30 = smov 72   ;;  %s138_s2 = smov 64   ;;  %v109_v9 = vld [vmem:[%s207_s0 + $0x7] sm:$0x1]   ;;  %v110_v10 = vld [vmem:[%s207_s0 + $0x6] sm:$0x1]  }
   0x6   :  { %13 = vrot.lane.b32.xlu0 %v102_v2, %s133_s16  ;;  %25 = vrot.lane.b32.xlu1 %v104_v3, %s134_s17  ;;  %s139_s7 = smov 56   ;;  %s140_s8 = smov 48   ;;  %v111_v11 = vld [vmem:[%s207_s0 + $0x5] sm:$0x1]   ;;  %v112_v12 = vld [vmem:[%s207_s0 + $0x4] sm:$0x1]  }
   0x7   :  { %s141_s13 = smov 40   ;;  %s142_s14 = smov 32   ;;  %v113_v13 = vld [vmem:[%s207_s0 + $0x3] sm:$0x1]   ;;  %v114_v14 = vld [vmem:[%s207_s0 + $0x2] sm:$0x1]  }
   0x8   :  { %s143_s19 = smov 24   ;;  %s144_s20 = smov 16   ;;  %v115_v15 = vld [vmem:[%s207_s0 + $0x1] sm:$0x1]   ;;  %vm27_vm4 = vcmask 851712   ;;  %vm33_vm5 = vcmask 786112  }
   0x9   :  { %s145_s0 = smov 8   ;;  %vm39_vm6 = vcmask 720512   ;;  %vm45_vm7 = vcmask 654912   ;;  %vm51_vm8 = vcmask 589312   ;;  %vm57_vm9 = vcmask 523712  }
   0xa   :  { %31 = vrot.lane.b32.xlu0 %v105_v4, %s135_s24  ;;  %37 = vrot.lane.b32.xlu1 %v106_v5, %s136_s25  ;;  %vm63_vm10 = vcmask 458112   ;;  %vm69_vm11 = vcmask 392512   ;;  %vm75_vm12 = vcmask 326912   ;;  %vm81_vm13 = vcmask 261312  }
   0xb   :  { %vm87_vm14 = vcmask 195712   ;;  %vm93_vm15 = vcmask 130112  }
   0xe   :  { %43 = vrot.lane.b32.xlu0 %v107_v7, %s137_s30  ;;  %49 = vrot.lane.b32.xlu1 %v108_v8, %s138_s2 }
  0x12   :  { %55 = vrot.lane.b32.xlu0 %v109_v9, %s139_s7  ;;  %61 = vrot.lane.b32.xlu1 %v110_v10, %s140_s8 }
  0x16   :  { %67 = vrot.lane.b32.xlu0 %v111_v11, %s141_s13  ;;  %73 = vrot.lane.b32.xlu1 %v112_v12, %s142_s14 }
  0x1a   :  { %79 = vrot.lane.b32.xlu0 %v113_v13, %s143_s19  ;;  %85 = vrot.lane.b32.xlu1 %v114_v14, %s144_s20 }
  0x1e   :  { %91 = vrot.lane.b32.xlu0 %v115_v15, %s145_s0 }
  0x74   :  { %v8_v16 = vpop.permute.xlu0 %7   ;;  %v20_v17 = vpop.permute.xlu1 %19  }
  0x75   :  { %10 = vst.msk [vmem:[#allocation0] sm:$0x1] %vm9_vm1, %v8_v16  }
  0x78   :  { %v14_v18 = vpop.permute.xlu0 %13   ;;  %v26_v19 = vpop.permute.xlu1 %25  }
  0x79   :  { %16 = vst.msk [vmem:[#allocation0] sm:$0x1] %vm15_vm2, %v14_v18  }
  0x7a   :  { %22 = vst.msk [vmem:[#allocation0] sm:$0x1] %vm21_vm3, %v20_v17  }
  0x7b   :  { %28 = vst.msk [vmem:[#allocation0] sm:$0x1] %vm27_vm4, %v26_v19  }
  0x7c   :  { %v32_v20 = vpop.permute.xlu0 %31   ;;  %v38_v21 = vpop.permute.xlu1 %37  }
  0x7d   :  { %34 = vst.msk [vmem:[#allocation0] sm:$0x1] %vm33_vm5, %v32_v20  }
  0x7e   :  { %40 = vst.msk [vmem:[#allocation0] sm:$0x1] %vm39_vm6, %v38_v21  }
  0x80   :  { %v44_v22 = vpop.permute.xlu0 %43   ;;  %v50_v23 = vpop.permute.xlu1 %49  }
  0x81   :  { %46 = vst.msk [vmem:[#allocation0] sm:$0x1] %vm45_vm7, %v44_v22  }
  0x82   :  { %52 = vst.msk [vmem:[#allocation0] sm:$0x1] %vm51_vm8, %v50_v23  }
  0x84   :  { %v56_v24 = vpop.permute.xlu0 %55   ;;  %v62_v25 = vpop.permute.xlu1 %61  }
  0x85   :  { %58 = vst.msk [vmem:[#allocation0] sm:$0x1] %vm57_vm9, %v56_v24  }
  0x86   :  { %64 = vst.msk [vmem:[#allocation0] sm:$0x1] %vm63_vm10, %v62_v25  }
  0x88   :  { %v68_v26 = vpop.permute.xlu0 %67   ;;  %v74_v27 = vpop.permute.xlu1 %73  }
  0x89   :  { %70 = vst.msk [vmem:[#allocation0] sm:$0x1] %vm69_vm11, %v68_v26  }
  0x8a   :  { %76 = vst.msk [vmem:[#allocation0] sm:$0x1] %vm75_vm12, %v74_v27  }
  0x8c   :  { %v80_v28 = vpop.permute.xlu0 %79   ;;  %v86_v29 = vpop.permute.xlu1 %85  }
  0x8d   :  { %82 = vst.msk [vmem:[#allocation0] sm:$0x1] %vm81_vm13, %v80_v28  }
  0x8e   :  { %88 = vst.msk [vmem:[#allocation0] sm:$0x1] %vm87_vm14, %v86_v29  }
  0x90   :  { %v92_v30 = vpop.permute.xlu0 %91  }
  0x91   :  { %94 = vst.msk [vmem:[#allocation0] sm:$0x1] %vm93_vm15, %v92_v30  }
  0x98   :  { %v98_v31 = vld [vmem:[#allocation0] sm:$0x1] }
  0x99   :  { %100 = vst [vmem:[%s208_s1] sm:$0x1] %v98_v31 }

// kernel: tile.28
= control target key start
LH: loop header
LB: loop body
LE: loop exit
PB: predicated region body
PF: predicated region fallthrough
CT: control target
= control target key end

     0   :  { %s28_s0 = inlined_call_operand.vmem [shape: f32[8], index: 0, kind: input, shape index: {}]   ;;  %s29_s1 = inlined_call_operand.vmem [shape: f32[16,8], index: 1, kind: output, shape index: {}]  }
   0x1   :  { %v4_v0 = vld [vmem:[%s28_s0] ss:$0 sm:$0xff] }
   0x2   :  { %5 = vst [vmem:[%s29_s1] sm:$0xff] %v4_v0  ;;  %8 = vst [vmem:[%s29_s1 + $0x8] sm:$0xff] %v4_v0 }

// kernel: decoder_block_forward.2
= control target key start
LH: loop header
LB: loop body
LE: loop exit
PB: predicated region body
PF: predicated region fallthrough
CT: control target
= control target key end

     0   :  { %s1732_s24 = smov 0   ;;  %s1734_s25 = smov 0   ;;  %s2015_s0 = inlined_call_operand.vmem [shape: bf16[2,14,72,128], index: 0, kind: input, shape index: {}, may-alias: {0,1,2}]   ;;  %s2016_s1 = inlined_call_operand.vmem [shape: bf16[2,14,72,128], index: 1, kind: input, shape index: {}, may-alias: {0,1,2}]   ;;  %s2017_s2 = inlined_call_operand.vmem [shape: bf16[2,14,72,128], index: 2, kind: input, shape index: {}, may-alias: {0,1,2}]   ;;  %s2018_s3 = inlined_call_operand.vmem [shape: bf16[384,128], index: 3, kind: input, shape index: {}]   ;;  %s2019_s4 = inlined_call_operand.vmem [shape: f32[1,128], index: 4, kind: input, shape index: {}]   ;;  %s2020_s5 = inlined_call_operand.vmem [shape: bf16[2,12,72,128], index: 5, kind: output, shape index: {0}]   ;;  %s2021_s6 = inlined_call_operand.vmem [shape: f32[192,128], index: 6, kind: output, shape index: {1}]   ;;  %s2022_s7 = inlined_call_operand.vmem [shape: f32[192,128], index: 7, kind: output, shape index: {2}]  }
   0x1   :  { %s1736_s26 = smov 0   ;;  %s1738_s27 = smov 0  }
   0x2   :  { %s1740_s28 = smov 0  }
   0x3 LB: > { %s27_s29 = sadd.s32 1, %s1680_s26  ;;  %s30_s30 = sadd.s32 1, %s1684_s27  ;;  %s1688_s28 = sphi %s1740_s28, %s18_s28   ;;  %s1684_s27 = sphi %s1738_s27, %s2028_s27   ;;  %s1680_s26 = sphi %s1736_s26, %s2027_s26   ;;  %s1676_s25 = sphi %s1734_s25, %s2026_s25   ;;  %s1672_s24 = sphi %s1732_s24, %s2025_s24  }
   0x4   : > { %p28_p0 = scmp.ge.s32.totalorder %s27_s29, 12  ;;  %p1309_p1 = scmp.ge.s32.totalorder %s1688_s28, 1 }
   0x5   : > { %p310_p2 = scmp.lt.s32.totalorder %s1688_s28, 25 }
   0x6   : > { %s2030_s29 = smov (%p28_p0, %s27_s29), 0  ;;  %s2032_s30 = smov (!%p28_p0, %s30_s30), %s1684_s27 }
   0x7   : > { %p311_p3 = pnand %p1309_p1, %p310_p2  ;;  %p32_p4 = scmp.ge.s32.totalorder %s2032_s30, 2 }
   0x8   : > { %v1611_v0 = vld [vmem:[%s2018_s3 + $0x40] sm:$0xff] (!%p311_p3)   ;;  %v1690_v1 = vmov (!%p311_p3), 0.0   ;;  %v1613_v3 = vld [vmem:[%s2018_s3 + $0x48] sm:$0xff] (!%p311_p3)   ;;  %vm1691_vm0 = vmmov (!%p311_p3), 0   ;;  %p382_p5 = scmp.lt.s32.totalorder (!%p311_p3), %s1676_s25, 1  ;;  %s391_s16 = sadd.s32 (!%p311_p3), 1, %s1672_s24 }
   0x9   : > { %s2034_s30 = smov (%p32_p4, %s2032_s30), 0  ;;  %314 = sbr.rel (%p311_p3) target bundleno = 347 (0x15b), region = 40 }
   0xa   : > { %2023 = sst [smem:[#allocation2_spill]] %s2034_s30  ;;  %1439 = vmatprep.subr.bf16.mxu0 (!%p311_p3), %v1690_v1  ;;  %1475 = vmatprep.subr.bf16.mxu1 (!%p311_p3), %v1690_v1  ;;  %v1612_v2 = vld [vmem:[%s2018_s3] sm:$0xff] (!%p311_p3)   ;;  %v1614_v4 = vld [vmem:[%s2018_s3 + $0x8] sm:$0xff] (!%p311_p3)   ;;  %p394_p6 = scmp.lt.s32.totalorder (!%p311_p3), %s391_s16, 13  ;;  %v1615_v5 = vld [vmem:[%s2018_s3 + $0x50] sm:$0xff] (!%p311_p3)  }
   0xb   : > { %1440 = vmatpush3.bf16.msra.mxu0 (!%p311_p3), %v1611_v0  ;;  %1455 = vmatprep.mubr.msk.bf16.mxu0 (!%p311_p3), %vm1691_vm0, %v1690_v1  ;;  %v1616_v6 = vld [vmem:[%s2018_s3 + $0x10] sm:$0xff] (!%p311_p3)   ;;  %p384_p7 = scmp.lt.s32.totalorder (!%p311_p3), %s1672_s24, 13  ;;  %v1617_v7 = vld [vmem:[%s2018_s3 + $0x58] sm:$0xff] (!%p311_p3)   ;;  %s402_s14 = sadd.s32 (!%p311_p3), 2, %s1672_s24  ;;  %v1619_v9 = vld [vmem:[%s2018_s3 + $0x60] sm:$0xff] (!%p311_p3)  }
   0xc   : > { %1476 = vmatpush3.bf16.msra.mxu1 (!%p311_p3), %v1612_v2  ;;  %1441 = vmatprep.subr.bf16.mxu0 (!%p311_p3), %v1690_v1  ;;  %v1618_v8 = vld [vmem:[%s2018_s3 + $0x18] sm:$0xff] (!%p311_p3)   ;;  %p405_p8 = scmp.lt.s32.totalorder (!%p311_p3), %s402_s14, 13  ;;  %v1620_v10 = vld [vmem:[%s2018_s3 + $0x20] sm:$0xff] (!%p311_p3)   ;;  %v1621_v11 = vld [vmem:[%s2018_s3 + $0x68] sm:$0xff] (!%p311_p3)   ;;  %p415_p9 = scmp.lt.s32.totalorder (!%p311_p3), %s1672_s24, 11 }
   0xd   : > { %1477 = vmatprep.subr.bf16.mxu1 (!%p311_p3), %v1690_v1  ;;  %1491 = vmatprep.mubr.msk.bf16.mxu1 (!%p311_p3), %vm1691_vm0, %v1690_v1  ;;  %v1622_v12 = vld [vmem:[%s2018_s3 + $0x28] sm:$0xff] (!%p311_p3)   ;;  %v1623_v13 = vld [vmem:[%s2018_s3 + $0x70] sm:$0xff] (!%p311_p3)   ;;  %v1625_v15 = vld [vmem:[%s2018_s3 + $0x78] sm:$0xff] (!%p311_p3)  }
   0xe   : > { %v1624_v14 = vld [vmem:[%s2018_s3 + $0x30] sm:$0xff] (!%p311_p3)   ;;  %v1626_v16 = vld [vmem:[%s2018_s3 + $0x38] sm:$0xff] (!%p311_p3)   ;;  %v1629_v18 = vld [vmem:[%s2018_s3 + $0x80] sm:$0xff] (!%p311_p3)  }
   0xf   : > { %1442 = vmatpush3.bf16.msra.mxu0 (!%p311_p3), %v1613_v3  ;;  %v1630_v20 = vld [vmem:[%s2018_s3 + $0x88] sm:$0xff] (!%p311_p3)   ;;  %v1633_v23 = vld [vmem:[%s2018_s3 + $0x90] sm:$0xff] (!%p311_p3)   ;;  %v1636_v24 = vld [vmem:[%s2018_s3 + $0x98] sm:$0xff] (!%p311_p3)  }
  0x10   : > { %s1789_s17 = scalar_select %p382_p5, %s1676_s25, 1  ;;  %1478 = vmatpush3.bf16.msra.mxu1 %v1614_v4  ;;  %1443 = vmatprep.subr.bf16.mxu0 %v1690_v1  ;;  %v1637_v27 = vld [vmem:[%s2018_s3 + $0xa0] sm:$0xff]   ;;  %v1640_v28 = vld [vmem:[%s2018_s3 + $0xa8] sm:$0xff]   ;;  %v1641_v31 = vld [vmem:[%s2018_s3 + $0xb0] sm:$0xff]  }
  0x11   : > { %s2036_s16 = smov (!%p394_p6, %s391_s16), 13  ;;  %1479 = vmatprep.subr.bf16.mxu1 %v1690_v1  ;;  %s2038_s14 = smov (!%p405_p8, %s402_s14), 13  ;;  %v1644_v32 = vld [vmem:[%s2018_s3 + $0xb8] sm:$0xff]  }
  0x12   : > { %s1795_s20 = smul.u32 126, %s1789_s17 }
  0x13   : > { %s1565_s23 = smul.u32 9, %s2036_s16  ;;  %1444 = vmatpush3.bf16.msra.mxu0 %v1615_v5 }
  0x14   : > { %s385_s10 = scalar_select %p384_p7, %s1672_s24, 13  ;;  %1480 = vmatpush3.bf16.msra.mxu1 %v1616_v6  ;;  %1445 = vmatprep.subr.bf16.mxu0 %v1690_v1 }
  0x15   : > { %s398_s13 = sadd.s32 %s1565_s23, %s1795_s20  ;;  %1481 = vmatprep.subr.bf16.mxu1 %v1690_v1  ;;  %s1566_s8 = smul.u32 9, %s2038_s14 }
  0x16   : > { %s1311_s15 = sshll.u32 %s398_s13, 2  ;;  %s1563_s16 = smul.u32 9, %s385_s10 }
  0x17   : > { %1446 = vmatpush3.bf16.msra.mxu0 %v1617_v7  ;;  %s1824_s9 = scalar_lea.vmem %s2016_s1, %s1311_s15  ;;  %s409_s12 = sadd.s32 %s1566_s8, %s1795_s20 }
  0x18   : > { %1482 = vmatpush3.bf16.msra.mxu1 %v1618_v8  ;;  %1447 = vmatprep.subr.bf16.mxu0 %v1690_v1  ;;  %s388_s11 = sadd.s32 %s1795_s20, %s1563_s16  ;;  %v1627_v17 = vld [vmem:[%s1824_s9] sm:$0xff]   ;;  %s1312_s16 = sshll.u32 %s409_s12, 2  ;;  %v1631_v21 = vld [vmem:[%s1824_s9 + $0x8] sm:$0xff]   ;;  %v1634_v25 = vld [vmem:[%s1824_s9 + $0x10] sm:$0xff]  }
  0x19   : > { %1483 = vmatprep.subr.bf16.mxu1 %v1690_v1  ;;  %s1310_s10 = sshll.u32 %s388_s11, 2  ;;  %s1868_s22 = scalar_lea.vmem %s2017_s2, %s1312_s16  ;;  %v1638_v29 = vld [vmem:[%s1824_s9 + $0x18] sm:$0xff]   ;;  %v1642_v33 = vld [vmem:[%s1824_s9 + $0x20] ss:$0 sps:$4 sm:$0xff]  }
  0x1a   : > { %s1831_s18 = scalar_lea.vmem %s2015_s0, %s1310_s10  ;;  %v1645_v35 = vld [vmem:[%s1868_s22] sm:$0xff]   ;;  %v1646_v36 = vld [vmem:[%s1868_s22 + $0x18] sm:$0xff]   ;;  %v1647_v37 = vld [vmem:[%s1868_s22 + $0x8] sm:$0xff]   ;;  %s422_s13 = smul.u32 12, %s1676_s25 }
  0x1b   : > { %1448 = vmatpush3.bf16.msra.mxu0 %v1619_v9  ;;  %v1628_v19 = vld [vmem:[%s1831_s18] sm:$0xff]   ;;  %v1632_v22 = vld [vmem:[%s1831_s18 + $0x8] sm:$0xff]   ;;  %v1635_v26 = vld [vmem:[%s1831_s18 + $0x10] sm:$0xff]   ;;  %s416_s9 = scalar_select %p415_p9, %s1672_s24, 11 }
  0x1c   : > { %1484 = vmatpush3.bf16.msra.mxu1 %v1620_v10  ;;  %1449 = vmatprep.subr.bf16.mxu0 %v1690_v1  ;;  %v1639_v30 = vld [vmem:[%s1831_s18 + $0x18] sm:$0xff]   ;;  %v1643_v34 = vld [vmem:[%s1831_s18 + $0x20] ss:$0 sps:$4 sm:$0xff]   ;;  %v1649_v39 = vld [vmem:[%s1868_s22 + $0x10] sm:$0xff]   ;;  %s1568_s18 = smul.u32 108, %s1789_s17  ;;  %s423_s19 = sadd.s32 %s1672_s24, %s422_s13 }
  0x1d   : > { %1485 = vmatprep.subr.bf16.mxu1 %v1690_v1  ;;  %v1648_v38 = vld [vmem:[%s1868_s22 + $0x20] ss:$0 sps:$4 sm:$0xff]   ;;  %s1567_s22 = smul.u32 9, %s416_s9  ;;  %p424_p10 = scmp.lt.s32.totalorder %s423_s19, 23 }
  0x1f   : > { %1450 = vmatpush3.bf16.msra.mxu0 %v1621_v11  ;;  %s419_s30 = sadd.s32 %s1568_s18, %s1567_s22  ;;  %s2040_s19 = smov (!%p424_p10, %s423_s19), 23 }
  0x20   : > { %1486 = vmatpush3.bf16.msra.mxu1 %v1622_v12  ;;  %1451 = vmatprep.subr.bf16.mxu0 %v1690_v1  ;;  %s1313_s10 = sshll.u32 %s419_s30, 2  ;;  %s1314_s25 = sshll.u32 %s2040_s19, 3 }
  0x21   : > { %1487 = vmatprep.subr.bf16.mxu1 %v1690_v1  ;;  %s1966_s14 = scalar_lea.vmem %s2020_s5, %s1313_s10  ;;  %s427_s16 = scalar_lea.vmem %s2021_s6, %s1314_s25 }
  0x22   : > { %s435_s8 = scalar_lea.vmem %s2022_s7, %s1314_s25 }
  0x23   : > { %1452 = vmatpush3.bf16.msra.mxu0 %v1623_v13 }
  0x24   : > { %1488 = vmatpush3.bf16.msra.mxu1 %v1624_v14  ;;  %1453 = vmatprep.subr.bf16.mxu0 %v1690_v1 }
  0x25   : > { %1489 = vmatprep.subr.bf16.mxu1 %v1690_v1 }
  0x27   : > { %1454 = vmatpush3.bf16.msra.mxu0 %v1625_v15 }
  0x28   : > { %1490 = vmatpush3.bf16.msra.mxu1 %v1626_v16  ;;  %1511 = vmatprep.subr.bf16.mxu0 %v1690_v1 }
  0x29   : > { %1547 = vmatprep.subr.bf16.mxu1 %v1690_v1 }
  0x2a   : > { %1456 = vmatmul.mubr.bf16.vlgmr.msra.gmra.mrb[0].mxu0 %v1627_v17 }
  0x2b   : > { %1492 = vmatmul.mubr.bf16.vlgmr.msra.gmra.mrb[0].mxu1 %v1628_v19  ;;  %1512 = vmatpush3.bf16.msra.mxu0 %v1629_v18 }
  0x2c   : > { %1513 = vmatprep.subr.bf16.mxu0 %v1690_v1  ;;  %1459 = vmatprep.mubr.msk.bf16.mxu0 %vm1691_vm0, %v1690_v1 }
  0x2d   : > { %1495 = vmatprep.mubr.msk.bf16.mxu1 %vm1691_vm0, %v1690_v1  ;;  %1555 = vmatpush3.bf16.msra.mxu1 %v1629_v18 }
  0x2e   : > { %1548 = vmatprep.subr.bf16.mxu1 %v1690_v1 }
  0x2f   : > { %1514 = vmatpush3.bf16.msra.mxu0 %v1630_v20 }
  0x30   : > { %1515 = vmatprep.subr.bf16.mxu0 %v1690_v1 }
  0x31   : > { %1556 = vmatpush3.bf16.msra.mxu1 %v1630_v20 }
  0x32   : > { %1460 = vmatmul.mubr.bf16.gmra.mrb[4].mxu0 %v1631_v21  ;;  %1549 = vmatprep.subr.bf16.mxu1 %v1690_v1 }
  0x33   : > { %1496 = vmatmul.mubr.bf16.gmra.mrb[4].mxu1 %v1632_v22  ;;  %1516 = vmatpush3.bf16.msra.mxu0 %v1633_v23 }
  0x34   : > { %1463 = vmatprep.mubr.msk.bf16.mxu0 %vm1691_vm0, %v1690_v1  ;;  %1499 = vmatprep.mubr.msk.bf16.mxu1 %vm1691_vm0, %v1690_v1 }
  0x35   : > { %1517 = vmatprep.subr.bf16.mxu0 %v1690_v1  ;;  %1557 = vmatpush3.bf16.msra.mxu1 %v1633_v23 }
  0x36   : > { %1550 = vmatprep.subr.bf16.mxu1 %v1690_v1 }
  0x37   : > { %1518 = vmatpush3.bf16.msra.mxu0 %v1636_v24 }
  0x38   : > { %1519 = vmatprep.subr.bf16.mxu0 %v1690_v1 }
  0x39   : > { %1558 = vmatpush3.bf16.msra.mxu1 %v1636_v24 }
  0x3a   : > { %1464 = vmatmul.mubr.bf16.gmra.mrb[8].mxu0 %v1634_v25  ;;  %1551 = vmatprep.subr.bf16.mxu1 %v1690_v1 }
  0x3b   : > { %1500 = vmatmul.mubr.bf16.gmra.mrb[8].mxu1 %v1635_v26  ;;  %1520 = vmatpush3.bf16.msra.mxu0 %v1637_v27 }
  0x3c   : > { %1467 = vmatprep.mubr.msk.bf16.mxu0 %vm1691_vm0, %v1690_v1  ;;  %1503 = vmatprep.mubr.msk.bf16.mxu1 %vm1691_vm0, %v1690_v1 }
  0x3d   : > { %1559 = vmatpush3.bf16.msra.mxu1 %v1637_v27  ;;  %1521 = vmatprep.subr.bf16.mxu0 %v1690_v1 }
  0x3e   : > { %1552 = vmatprep.subr.bf16.mxu1 %v1690_v1 }
  0x3f   : > { %1522 = vmatpush3.bf16.msra.mxu0 %v1640_v28 }
  0x40   : > { %1523 = vmatprep.subr.bf16.mxu0 %v1690_v1 }
  0x41   : > { %1560 = vmatpush3.bf16.msra.mxu1 %v1640_v28 }
  0x42   : > { %1468 = vmatmul.mubr.bf16.gmra.mrb[12].mxu0 %v1638_v29  ;;  %1553 = vmatprep.subr.bf16.mxu1 %v1690_v1  ;;  %v1958_v29 = vld [vmem:[%s2019_s4] ss:$0 sm:$0xff] }
  0x43   : > { %1504 = vmatmul.mubr.bf16.gmra.mrb[12].mxu1 %v1639_v30  ;;  %1471 = vmatprep.mubr.msk.bf16.mxu0 %vm1691_vm0, %v1690_v1 }
  0x44   : > { %1507 = vmatprep.mubr.msk.bf16.mxu1 %vm1691_vm0, %v1690_v1  ;;  %1524 = vmatpush3.bf16.msra.mxu0 %v1641_v31 }
  0x45   : > { %1561 = vmatpush3.bf16.msra.mxu1 %v1641_v31  ;;  %1525 = vmatprep.subr.bf16.mxu0 %v1690_v1 }
  0x46   : > { %1554 = vmatprep.subr.bf16.mxu1 %v1690_v1 }
  0x48   : > { %1526 = vmatpush3.bf16.msra.mxu0 %v1644_v32 }
  0x49   : > { %1562 = vmatpush3.bf16.msra.mxu1 %v1644_v32 }
  0x4a   : > { %1472 = vmatmul.mubr.bf16.gmra.mrb[16].mxu0 %v1642_v33 }
  0x4b   : > { %1508 = vmatmul.mubr.bf16.gmra.mrb[16].mxu1 %v1643_v34  ;;  %1527 = vmatprep.mubr.msk.bf16.mxu0 %vm1691_vm0, %v1690_v1 }
  0x4c   : > { %1539 = vmatprep.mubr.msk.bf16.mxu1 %vm1691_vm0, %v1690_v1 }
  0x52   : > { %1528 = vmatmul.mubr.bf16.vlgmr.msra.gmra.mrb[20].mxu0 %v1645_v35 }
  0x53   : > { %1540 = vmatmul.mubr.bf16.vlgmr.msra.gmra.mrb[20].mxu1 %v1646_v36  ;;  %1531 = vmatprep.mubr.msk.bf16.mxu0 %vm1691_vm0, %v1690_v1 }
  0x54   : > { %1543 = vmatprep.mubr.msk.bf16.mxu1 %vm1691_vm0, %v1690_v1 }
  0x5a   : > { %1532 = vmatmul.mubr.bf16.gmra.mrb[24].mxu0 %v1647_v37 }
  0x5b   : > { %1544 = vmatmul.mubr.bf16.gmra.mrb[24].mxu1 %v1648_v38  ;;  %1535 = vmatprep.mubr.msk.bf16.mxu0 %vm1691_vm0, %v1690_v1 }
  0x62   : > { %1536 = vmatmul.mubr.bf16.gmra.mrb[28].mxu0 %v1649_v39 }
  0xfd   : > { %v599_v40 = vpop.f32.mrb[0].mxu0 }
  0xfe   : > { %v747_v41 = vpop.f32.mrb[0].mxu1  ;;  %v1457_v42 = vpop.f32.mrb[1].mxu0 }
  0xff   : > { %v748_v43 = vadd.f32 %v747_v41, %v599_v40  ;;  %v1493_v44 = vpop.f32.mrb[1].mxu1  ;;  %v602_v45 = vpop.f32.mrb[2].mxu0 }
 0x100   : > { %v750_v46 = vpop.f32.mrb[2].mxu1  ;;  %v1458_v47 = vpop.f32.mrb[3].mxu0 }
 0x101   : > { %v751_v48 = vadd.f32 %v750_v46, %v602_v45  ;;  %v1494_v49 = vpop.f32.mrb[3].mxu1 }
 0x105   : > { %v607_v50 = vpop.f32.mrb[4].mxu0 }
 0x106   : > { %v755_v51 = vpop.f32.mrb[4].mxu1  ;;  %v1461_v52 = vpop.f32.mrb[5].mxu0 }
 0x107   : > { %v1944_v53 = vadd.f32 %v755_v51, %v607_v50  ;;  %v1497_v54 = vpop.f32.mrb[5].mxu1  ;;  %v610_v55 = vpop.f32.mrb[6].mxu0 }
 0x108   : > { %v758_v56 = vpop.f32.mrb[6].mxu1  ;;  %v1462_v57 = vpop.f32.mrb[7].mxu0 }
 0x109   : > { %v1946_v58 = vadd.f32 %v758_v56, %v610_v55  ;;  %v1498_v59 = vpop.f32.mrb[7].mxu1 }
 0x10d   : > { %v615_v60 = vpop.f32.mrb[8].mxu0 }
 0x10e   : > { %v763_v61 = vpop.f32.mrb[8].mxu1  ;;  %v1465_v62 = vpop.f32.mrb[9].mxu0 }
 0x10f   : > { %v1948_v63 = vadd.f32 %v763_v61, %v615_v60  ;;  %v1501_v0 = vpop.f32.mrb[9].mxu1  ;;  %v618_v1 = vpop.f32.mrb[10].mxu0 }
 0x110   : > { %v766_v2 = vpop.f32.mrb[10].mxu1  ;;  %v1466_v3 = vpop.f32.mrb[11].mxu0 }
 0x111   : > { %v1950_v4 = vadd.f32 %v766_v2, %v618_v1  ;;  %v1502_v5 = vpop.f32.mrb[11].mxu1 }
 0x115   : > { %v623_v6 = vpop.f32.mrb[12].mxu0 }
 0x116   : > { %v771_v7 = vpop.f32.mrb[12].mxu1  ;;  %v1469_v8 = vpop.f32.mrb[13].mxu0 }
 0x117   : > { %v772_v9 = vadd.f32 %v771_v7, %v623_v6  ;;  %v1505_v10 = vpop.f32.mrb[13].mxu1  ;;  %v626_v11 = vpop.f32.mrb[14].mxu0 }
 0x118   : > { %v774_v12 = vpop.f32.mrb[14].mxu1  ;;  %v1470_v13 = vpop.f32.mrb[15].mxu0 }
 0x119   : > { %v775_v14 = vadd.f32 %v774_v12, %v626_v11  ;;  %v1506_v15 = vpop.f32.mrb[15].mxu1 }
 0x11d   : > { %v631_v16 = vpop.f32.mrb[16].mxu0 }
 0x11e   : > { %v1473_v17 = vpop.f32.mrb[17].mxu0  ;;  %v779_v18 = vpop.f32.mrb[16].mxu1 }
 0x11f   : > { %v780_v19 = vadd.f32 %v779_v18, %v631_v16  ;;  %v634_v20 = vpop.f32.mrb[18].mxu0  ;;  %v1509_v21 = vpop.f32.mrb[17].mxu1 }
 0x120   : > { %v1474_v22 = vpop.f32.mrb[19].mxu0  ;;  %v782_v23 = vpop.f32.mrb[18].mxu1 }
 0x121   : > { %v1510_v24 = vpop.f32.mrb[19].mxu1 }
 0x125   : > { %v920_v25 = vpop.f32.mrb[20].mxu0 }
 0x126   : > { %v958_v26 = vadd.f32 %v920_v25, %v748_v43  ;;  %v944_v27 = vpop.f32.mrb[20].mxu1  ;;  %v1529_v28 = vpop.f32.mrb[21].mxu0 }
 0x127   : > { %v964_v30 = vadd.f32 %v944_v27, %v772_v9  ;;  %v1541_v31 = vpop.f32.mrb[21].mxu1  ;;  %v923_v32 = vpop.f32.mrb[22].mxu0 }
 0x128   : > { %v959_v33 = vadd.f32 %v923_v32, %v751_v48  ;;  %v947_v34 = vpop.f32.mrb[22].mxu1  ;;  %v1530_v35 = vpop.f32.mrb[23].mxu0  ;;  %v974_v38 = vadd.f32 %v1958_v29, %v958_v26 }
 0x129   : > { %v965_v36 = vadd.f32 %v947_v34, %v775_v14  ;;  %v1542_v37 = vpop.f32.mrb[23].mxu1  ;;  %v980_v40 = vadd.f32 %v1958_v29, %v964_v30 }
 0x12a   : > { %v975_v39 = vadd.f32 %v1958_v29, %v959_v33 }
 0x12b   : > { %v981_v41 = vadd.f32 %v1958_v29, %v965_v36 }
 0x12c   : > { %v983_v42 = vpack.c.bf16 %v975_v39, %v974_v38 }
 0x12d   : > { %v986_v43 = vpack.c.bf16 %v981_v41, %v980_v40  ;;  %v928_v44 = vpop.f32.mrb[24].mxu0 }
 0x12e   : > { %1381 = vst [vmem:[%s1966_s14] sm:$0xff] %v983_v42   ;;  %v1029_v45 = vunpack.c.l.bf16 %v983_v42  ;;  %v1030_v46 = vunpack.c.h.bf16 %v983_v42  ;;  %v960_v47 = vadd.f32 %v928_v44, %v1944_v53  ;;  %v952_v48 = vpop.f32.mrb[24].mxu1  ;;  %v1533_v49 = vpop.f32.mrb[25].mxu0 }
 0x12f   : > { %1399 = vst [vmem:[%s1966_s14 + $0x18] sm:$0xff] %v986_v43   ;;  %v966_v50 = vadd.f32 %v952_v48, %v780_v19  ;;  %v931_v51 = vpop.f32.mrb[26].mxu0  ;;  %v1545_v52 = vpop.f32.mrb[25].mxu1  ;;  %v1035_v23 = vunpack.c.l.bf16 %v986_v43  ;;  %v1036_v27 = vunpack.c.h.bf16 %v986_v43 }
 0x130   : > { %v961_v54 = vadd.f32 %v931_v51, %v1946_v58  ;;  %v1534_v55 = vpop.f32.mrb[27].mxu0  ;;  %v955_v56 = vpop.f32.mrb[26].mxu1  ;;  %v1045_v57 = vsub.f32 %v1029_v45, %v1958_v29  ;;  %v1046_v59 = vsub.f32 %v1030_v46, %v1958_v29  ;;  %v976_v53 = vadd.f32 %v1958_v29, %v960_v47 }
 0x131   : > { %v982_v60 = vadd.f32 %v1958_v29, %v966_v50  ;;  %v1546_v61 = vpop.f32.mrb[27].mxu1  ;;  %v1051_v30 = vsub.f32 %v1035_v23, %v1958_v29  ;;  %v1052_v34 = vsub.f32 %v1036_v27, %v1958_v29 }
 0x132   : > { %v977_v62 = vadd.f32 %v1958_v29, %v961_v54  ;;  %v1068_v2 = vmul.f32 %v1045_v57, %v1045_v57  ;;  %v1069_v3 = vmul.f32 %v1046_v59, %v1046_v59  ;;  %v1054_v10 = vadd.f32 %v1046_v59, %v1045_v57 }
 0x133   : > { %v987_v0 = vpack.c.bf16 %v982_v60, %v982_v60  ;;  %v1074_v38 = vmul.f32 %v1051_v30, %v1051_v30  ;;  %v1075_v42 = vmul.f32 %v1052_v34, %v1052_v34 }
 0x134   : > { %v984_v1 = vpack.c.bf16 %v977_v62, %v976_v53  ;;  %v1077_v15 = vadd.f32 %v1069_v3, %v1068_v2 }
 0x135   : > { %1028 = vst [vmem:[%s1966_s14 + $0x20] sm:$0xf] %v987_v0  ;;  %v936_v5 = vpop.f32.mrb[28].mxu0  ;;  %v1037_v31 = vunpack.c.l.bf16 %v987_v0 }
 0x136   : > { %1397 = vst [vmem:[%s1966_s14 + $0x8] sm:$0xff] %v984_v1   ;;  %v1031_v58 = vunpack.c.l.bf16 %v984_v1  ;;  %v1032_v6 = vunpack.c.h.bf16 %v984_v1  ;;  %v962_v7 = vadd.f32 %v936_v5, %v1948_v63  ;;  %v1537_v8 = vpop.f32.mrb[29].mxu0 }
 0x137   : > { %v939_v9 = vpop.f32.mrb[30].mxu0  ;;  %v1053_v39 = vsub.f32 %v1037_v31, %v1958_v29 }
 0x138   : > { %v1047_v11 = vsub.f32 %v1031_v58, %v1958_v29  ;;  %v1048_v12 = vsub.f32 %v1032_v6, %v1958_v29  ;;  %v963_v13 = vadd.f32 %v939_v9, %v1950_v4  ;;  %v1538_v14 = vpop.f32.mrb[31].mxu0  ;;  %v978_v18 = vadd.f32 %v1958_v29, %v962_v7 }
 0x139   : > { %v1076_v45 = vmul.f32 %v1053_v39, %v1053_v39 }
 0x13a   : > { %v1055_v16 = vadd.f32 %v1054_v10, %v1047_v11  ;;  %v1070_v17 = vmul.f32 %v1047_v11, %v1047_v11  ;;  %v979_v19 = vadd.f32 %v1958_v29, %v963_v13  ;;  %v1071_v63 = vmul.f32 %v1048_v12, %v1048_v12 }
 0x13c   : > { %v1056_v20 = vadd.f32 %v1055_v16, %v1048_v12  ;;  %v1078_v21 = vadd.f32 %v1077_v15, %v1070_v17  ;;  %v985_v22 = vpack.c.bf16 %v979_v19, %v978_v18 }
 0x13e   : > { %v1079_v24 = vadd.f32 %v1078_v21, %v1071_v63  ;;  %1398 = vst [vmem:[%s1966_s14 + $0x10] sm:$0xff] %v985_v22   ;;  %v1033_v25 = vunpack.c.l.bf16 %v985_v22  ;;  %v1034_v26 = vunpack.c.h.bf16 %v985_v22 }
 0x140   : > { %v1049_v4 = vsub.f32 %v1033_v25, %v1958_v29  ;;  %v1050_v28 = vsub.f32 %v1034_v26, %v1958_v29 }
 0x142   : > { %v1057_v32 = vadd.f32 %v1056_v20, %v1049_v4  ;;  %v1072_v33 = vmul.f32 %v1049_v4, %v1049_v4  ;;  %v1073_v36 = vmul.f32 %v1050_v28, %v1050_v28 }
 0x144   : > { %v1058_v35 = vadd.f32 %v1057_v32, %v1050_v28  ;;  %v1080_v37 = vadd.f32 %v1079_v24, %v1072_v33 }
 0x146   : > { %v1059_v40 = vadd.f32 %v1058_v35, %v1051_v30  ;;  %v1081_v41 = vadd.f32 %v1080_v37, %v1073_v36 }
 0x148   : > { %v1060_v43 = vadd.f32 %v1059_v40, %v1052_v34  ;;  %v1082_v44 = vadd.f32 %v1081_v41, %v1074_v38 }
 0x14a   : > { %v1061_v46 = vadd.f32 %v1060_v43, %v1053_v39  ;;  %v1083_v47 = vadd.f32 %v1082_v44, %v1075_v42 }
 0x14c   : > { %v1062_v48 = vrot.slane %v1061_v46, 4  ;;  %v1084_v49 = vadd.f32 %v1083_v47, %v1076_v45 }
 0x14e   : > { %v1063_v50 = vadd.f32 %v1062_v48, %v1061_v46  ;;  %v1085_v51 = vrot.slane %v1084_v49, 4 }
 0x150   : > { %v1064_v52 = vrot.slane %v1063_v50, 2  ;;  %v1086_v54 = vadd.f32 %v1085_v51, %v1084_v49 }
 0x152   : > { %v1065_v55 = vadd.f32 %v1064_v52, %v1063_v50  ;;  %v1087_v29 = vrot.slane %v1086_v54, 2 }
 0x154   : > { %v1066_v56 = vrot.slane %v1065_v55, 1  ;;  %v1088_v57 = vadd.f32 %v1087_v29, %v1086_v54 }
 0x156   : > { %v1067_v59 = vadd.f32 %v1066_v56, %v1065_v55  ;;  %v1089_v60 = vrot.slane %v1088_v57, 1 }
 0x158   : > { %v1090_v61 = vadd.f32 %v1089_v60, %v1088_v57  ;;  %1091 = vst [vmem:[%s427_s16] sm:$0xff] %v1067_v59 }
 0x15a   : > { %1092 = vst [vmem:[%s435_s8] sm:$0xff] %v1090_v61 }
 0x15b PF: > { %s18_s28 = sadd.s32 1, %s1688_s28   ;;  %s2024_s9 = sld [smem:[#allocation2_spill]] }
 0x15c   : > { %p15_p11 = scmp.ge.s32.totalorder %s18_s28, 26   ;;  %s2025_s24 = smov %s1680_s26 }
 0x15d   : > { %s2026_s25 = smov %s1684_s27  ;;  %s2027_s26 = smov %s2030_s29 }
 0x15e   :  { %17 = sbr.rel (!%p15_p11) target bundleno = 3 (0x3), region = 100 }
 0x161   : > { %s2028_s27 = smov %s2024_s9 }

// kernel: decoder_block_forward.3
= control target key start
LH: loop header
LB: loop body
LE: loop exit
PB: predicated region body
PF: predicated region fallthrough
CT: control target
= control target key end

     0   :  { %s695_s12 = smov 0   ;;  %s915_s0 = inlined_call_operand.vmem [shape: bf16[1728,128], index: 0, kind: input, shape index: {}]   ;;  %s916_s1 = inlined_call_operand.vmem [shape: f32[1,128], index: 1, kind: input, shape index: {}]   ;;  %s917_s2 = inlined_call_operand.vmem [shape: f32[1,128], index: 2, kind: input, shape index: {}]   ;;  %s918_s3 = inlined_call_operand.vmem [shape: f32[1728,128], index: 3, kind: output, shape index: {}]  }
   0x1 LB: > { %s514_s13 = sadd.s32 4294967295, %s673_s12   ;;  %p518_p0 = scmp.ge.s32.totalorder %s673_s12, 1  ;;  %s673_s12 = sphi %s695_s12, %s13_s12  }
   0x2   : > { %p138_p1 = scmp.lt.s32.totalorder %s673_s12, 5 }
   0x4   : > { %p139_p2 = pnand %p518_p0, %p138_p1 }
   0x5   : > { %s162_s14 = smul.u32 (!%p139_p2), 54, %s514_s13  ;;  %v711_v0 = vld [vmem:[%s916_s1] ss:$0 sm:$0xff] (!%p139_p2) }
   0x6   : > { %142 = sbr.rel (%p139_p2) target bundleno = 62 (0x3e), region = 32  ;;  %v720_v9 = vld [vmem:[%s917_s2] ss:$0 sm:$0xff] (!%p139_p2) }
   0x7   : > { %p163_p3 = scmp.lt.s32.totalorder (!%p139_p2), %s162_s14, 215 }
   0xd   : > { %s920_s14 = smov (!%p163_p3, %s162_s14), 215 }
   0xe   : > { %s519_s15 = sshll.u32 %s920_s14, 2  ;;  %s520_s21 = sshll.u32 %s920_s14, 3 }
   0xf   : > { %s706_s18 = scalar_lea.vmem %s915_s0, %s519_s15  ;;  %s729_s26 = scalar_lea.vmem %s918_s3, %s520_s21 }
  0x10   : > { %v526_v1 = vld [vmem:[%s706_s18] sm:$0xff]   ;;  %v633_v2 = vld [vmem:[%s706_s18 + $0x8] sm:$0xff]   ;;  %v634_v3 = vld [vmem:[%s706_s18 + $0x10] sm:$0xff]  }
  0x11   : > { %v527_v4 = vunpack.c.l.bf16 %v526_v1  ;;  %v528_v5 = vunpack.c.h.bf16 %v526_v1  ;;  %v531_v6 = vunpack.c.l.bf16 %v633_v2  ;;  %v532_v7 = vunpack.c.h.bf16 %v633_v2  ;;  %v635_v8 = vld [vmem:[%s706_s18 + $0x18] sm:$0xff]   ;;  %v636_v22 = vld [vmem:[%s706_s18 + $0x20] sm:$0xff]   ;;  %v637_v23 = vld [vmem:[%s706_s18 + $0x28] sm:$0xff]  }
  0x12   : > { %v535_v10 = vunpack.c.l.bf16 %v634_v3  ;;  %v536_v11 = vunpack.c.h.bf16 %v634_v3  ;;  %v539_v12 = vunpack.c.l.bf16 %v635_v8  ;;  %v540_v13 = vunpack.c.h.bf16 %v635_v8  ;;  %v638_v28 = vld [vmem:[%s706_s18 + $0x30] sm:$0xff]   ;;  %v639_v29 = vld [vmem:[%s706_s18 + $0x38] sm:$0xff]   ;;  %v640_v50 = vld [vmem:[%s706_s18 + $0x40] sm:$0xff]  }
  0x13   : > { %v289_v14 = vmul.f32 %v527_v4, %v711_v0  ;;  %v290_v15 = vmul.f32 %v528_v5, %v711_v0  ;;  %v291_v16 = vmul.f32 %v531_v6, %v711_v0  ;;  %v292_v17 = vmul.f32 %v532_v7, %v711_v0  ;;  %v641_v51 = vld [vmem:[%s706_s18 + $0x48] sm:$0xff]   ;;  %v642_v56 = vld [vmem:[%s706_s18 + $0x50] sm:$0xff]   ;;  %v643_v57 = vld [vmem:[%s706_s18 + $0x58] sm:$0xff]  }
  0x14   : > { %v293_v18 = vmul.f32 %v535_v10, %v711_v0  ;;  %v294_v19 = vmul.f32 %v536_v11, %v711_v0  ;;  %v295_v20 = vmul.f32 %v539_v12, %v711_v0  ;;  %v296_v21 = vmul.f32 %v540_v13, %v711_v0 }
  0x15   : > { %v350_v24 = vadd.f32 %v720_v9, %v289_v14  ;;  %v351_v25 = vadd.f32 %v720_v9, %v290_v15  ;;  %v352_v26 = vadd.f32 %v720_v9, %v291_v16  ;;  %v353_v27 = vadd.f32 %v720_v9, %v292_v17  ;;  %v644_v16 = vld [vmem:[%s706_s18 + $0x60] sm:$0xff]   ;;  %v645_v17 = vld [vmem:[%s706_s18 + $0x68] sm:$0xff]  }
  0x16   : > { %v354_v30 = vadd.f32 %v720_v9, %v293_v18  ;;  %v355_v31 = vadd.f32 %v720_v9, %v294_v19  ;;  %v356_v32 = vadd.f32 %v720_v9, %v295_v20  ;;  %v357_v33 = vadd.f32 %v720_v9, %v296_v21 }
  0x17   : > { %404 = vst [vmem:[%s729_s26] sm:$0xff] %v350_v24  ;;  %405 = vst [vmem:[%s729_s26 + $0x8] sm:$0xff] %v351_v25  ;;  %v543_v34 = vunpack.c.l.bf16 %v636_v22  ;;  %v544_v35 = vunpack.c.h.bf16 %v636_v22  ;;  %v547_v36 = vunpack.c.l.bf16 %v637_v23  ;;  %v548_v37 = vunpack.c.h.bf16 %v637_v23  ;;  %v646_v22 = vld [vmem:[%s706_s18 + $0x70] sm:$0xff]   ;;  %v647_v23 = vld [vmem:[%s706_s18 + $0x78] sm:$0xff]  }
  0x18   : > { %406 = vst [vmem:[%s729_s26 + $0x10] sm:$0xff] %v352_v26  ;;  %407 = vst [vmem:[%s729_s26 + $0x18] sm:$0xff] %v353_v27  ;;  %v551_v38 = vunpack.c.l.bf16 %v638_v28  ;;  %v552_v39 = vunpack.c.h.bf16 %v638_v28  ;;  %v555_v40 = vunpack.c.l.bf16 %v639_v29  ;;  %v556_v41 = vunpack.c.h.bf16 %v639_v29 }
  0x19   : > { %408 = vst [vmem:[%s729_s26 + $0x20] sm:$0xff] %v354_v30  ;;  %409 = vst [vmem:[%s729_s26 + $0x28] sm:$0xff] %v355_v31  ;;  %v297_v42 = vmul.f32 %v543_v34, %v711_v0  ;;  %v298_v43 = vmul.f32 %v544_v35, %v711_v0  ;;  %v299_v44 = vmul.f32 %v547_v36, %v711_v0  ;;  %v559_v62 = vunpack.c.l.bf16 %v640_v50 }
  0x1a   : > { %410 = vst [vmem:[%s729_s26 + $0x30] sm:$0xff] %v356_v32  ;;  %411 = vst [vmem:[%s729_s26 + $0x38] sm:$0xff] %v357_v33  ;;  %v300_v45 = vmul.f32 %v548_v37, %v711_v0  ;;  %v301_v46 = vmul.f32 %v551_v38, %v711_v0  ;;  %v302_v47 = vmul.f32 %v552_v39, %v711_v0  ;;  %v560_v63 = vunpack.c.h.bf16 %v640_v50  ;;  %v650_v50 = vld [vmem:[%s706_s18 + $0x90] sm:$0xff]  }
  0x1b   : > { %v303_v48 = vmul.f32 %v555_v40, %v711_v0  ;;  %v304_v49 = vmul.f32 %v556_v41, %v711_v0  ;;  %v358_v52 = vadd.f32 %v720_v9, %v297_v42  ;;  %v359_v53 = vadd.f32 %v720_v9, %v298_v43 }
  0x1c   : > { %v360_v54 = vadd.f32 %v720_v9, %v299_v44  ;;  %v361_v55 = vadd.f32 %v720_v9, %v300_v45  ;;  %v362_v58 = vadd.f32 %v720_v9, %v301_v46  ;;  %v363_v59 = vadd.f32 %v720_v9, %v302_v47  ;;  %v648_v44 = vld [vmem:[%s706_s18 + $0x80] sm:$0xff]   ;;  %v649_v45 = vld [vmem:[%s706_s18 + $0x88] sm:$0xff]  }
  0x1d   : > { %v364_v60 = vadd.f32 %v720_v9, %v303_v48  ;;  %v365_v61 = vadd.f32 %v720_v9, %v304_v49  ;;  %412 = vst [vmem:[%s729_s26 + $0x40] sm:$0xff] %v358_v52  ;;  %413 = vst [vmem:[%s729_s26 + $0x48] sm:$0xff] %v359_v53  ;;  %v563_v1 = vunpack.c.l.bf16 %v641_v51  ;;  %v564_v2 = vunpack.c.h.bf16 %v641_v51  ;;  %v651_v51 = vld [vmem:[%s706_s18 + $0x98] sm:$0xff]  }
  0x1e   : > { %414 = vst [vmem:[%s729_s26 + $0x50] sm:$0xff] %v360_v54  ;;  %415 = vst [vmem:[%s729_s26 + $0x58] sm:$0xff] %v361_v55  ;;  %v567_v3 = vunpack.c.l.bf16 %v642_v56  ;;  %v568_v4 = vunpack.c.h.bf16 %v642_v56  ;;  %v571_v5 = vunpack.c.l.bf16 %v643_v57  ;;  %v572_v6 = vunpack.c.h.bf16 %v643_v57 }
  0x1f   : > { %416 = vst [vmem:[%s729_s26 + $0x60] sm:$0xff] %v362_v58  ;;  %417 = vst [vmem:[%s729_s26 + $0x68] sm:$0xff] %v363_v59  ;;  %v305_v7 = vmul.f32 %v559_v62, %v711_v0  ;;  %v306_v8 = vmul.f32 %v560_v63, %v711_v0  ;;  %v307_v10 = vmul.f32 %v563_v1, %v711_v0  ;;  %v575_v28 = vunpack.c.l.bf16 %v644_v16 }
  0x20   : > { %418 = vst [vmem:[%s729_s26 + $0x70] sm:$0xff] %v364_v60  ;;  %419 = vst [vmem:[%s729_s26 + $0x78] sm:$0xff] %v365_v61  ;;  %v308_v11 = vmul.f32 %v564_v2, %v711_v0  ;;  %v309_v12 = vmul.f32 %v567_v3, %v711_v0  ;;  %v310_v13 = vmul.f32 %v568_v4, %v711_v0  ;;  %v576_v29 = vunpack.c.h.bf16 %v644_v16  ;;  %v654_v16 = vld [vmem:[%s706_s18 + $0xb0] sm:$0xff]  }
  0x21   : > { %v311_v14 = vmul.f32 %v571_v5, %v711_v0  ;;  %v312_v15 = vmul.f32 %v572_v6, %v711_v0  ;;  %v366_v18 = vadd.f32 %v720_v9, %v305_v7  ;;  %v367_v19 = vadd.f32 %v720_v9, %v306_v8 }
  0x22   : > { %v368_v20 = vadd.f32 %v720_v9, %v307_v10  ;;  %v369_v21 = vadd.f32 %v720_v9, %v308_v11  ;;  %v370_v24 = vadd.f32 %v720_v9, %v309_v12  ;;  %v371_v25 = vadd.f32 %v720_v9, %v310_v13  ;;  %v652_v10 = vld [vmem:[%s706_s18 + $0xa0] sm:$0xff]   ;;  %v653_v11 = vld [vmem:[%s706_s18 + $0xa8] sm:$0xff]  }
  0x23   : > { %v372_v26 = vadd.f32 %v720_v9, %v311_v14  ;;  %v373_v27 = vadd.f32 %v720_v9, %v312_v15  ;;  %420 = vst [vmem:[%s729_s26 + $0x80] sm:$0xff] %v366_v18  ;;  %421 = vst [vmem:[%s729_s26 + $0x88] sm:$0xff] %v367_v19  ;;  %v579_v30 = vunpack.c.l.bf16 %v645_v17  ;;  %v580_v31 = vunpack.c.h.bf16 %v645_v17  ;;  %v655_v17 = vld [vmem:[%s706_s18 + $0xb8] sm:$0xff]  }
  0x24   : > { %422 = vst [vmem:[%s729_s26 + $0x90] sm:$0xff] %v368_v20  ;;  %423 = vst [vmem:[%s729_s26 + $0x98] sm:$0xff] %v369_v21  ;;  %v583_v32 = vunpack.c.l.bf16 %v646_v22  ;;  %v584_v33 = vunpack.c.h.bf16 %v646_v22  ;;  %v587_v34 = vunpack.c.l.bf16 %v647_v23  ;;  %v588_v35 = vunpack.c.h.bf16 %v647_v23 }
  0x25   : > { %424 = vst [vmem:[%s729_s26 + $0xa0] sm:$0xff] %v370_v24  ;;  %425 = vst [vmem:[%s729_s26 + $0xa8] sm:$0xff] %v371_v25  ;;  %v313_v36 = vmul.f32 %v575_v28, %v711_v0  ;;  %v314_v37 = vmul.f32 %v576_v29, %v711_v0  ;;  %v315_v38 = vmul.f32 %v579_v30, %v711_v0  ;;  %v591_v56 = vunpack.c.l.bf16 %v648_v44 }
  0x26   : > { %426 = vst [vmem:[%s729_s26 + $0xb0] sm:$0xff] %v372_v26  ;;  %427 = vst [vmem:[%s729_s26 + $0xb8] sm:$0xff] %v373_v27  ;;  %v316_v39 = vmul.f32 %v580_v31, %v711_v0  ;;  %v317_v40 = vmul.f32 %v583_v32, %v711_v0  ;;  %v318_v41 = vmul.f32 %v584_v33, %v711_v0  ;;  %v592_v57 = vunpack.c.h.bf16 %v648_v44  ;;  %v658_v44 = vld [vmem:[%s706_s18 + $0xd0] sm:$0xff]  }
  0x27   : > { %v319_v42 = vmul.f32 %v587_v34, %v711_v0  ;;  %v320_v43 = vmul.f32 %v588_v35, %v711_v0  ;;  %v374_v46 = vadd.f32 %v720_v9, %v313_v36  ;;  %v375_v47 = vadd.f32 %v720_v9, %v314_v37 }
  0x28   : > { %v376_v48 = vadd.f32 %v720_v9, %v315_v38  ;;  %v377_v49 = vadd.f32 %v720_v9, %v316_v39  ;;  %v378_v52 = vadd.f32 %v720_v9, %v317_v40  ;;  %v379_v53 = vadd.f32 %v720_v9, %v318_v41  ;;  %v656_v38 = vld [vmem:[%s706_s18 + $0xc0] sm:$0xff]   ;;  %v657_v39 = vld [vmem:[%s706_s18 + $0xc8] sm:$0xff]  }
  0x29   : > { %v380_v54 = vadd.f32 %v720_v9, %v319_v42  ;;  %v381_v55 = vadd.f32 %v720_v9, %v320_v43  ;;  %428 = vst [vmem:[%s729_s26 + $0xc0] sm:$0xff] %v374_v46  ;;  %429 = vst [vmem:[%s729_s26 + $0xc8] sm:$0xff] %v375_v47  ;;  %v595_v58 = vunpack.c.l.bf16 %v649_v45  ;;  %v596_v59 = vunpack.c.h.bf16 %v649_v45 }
  0x2a   : > { %430 = vst [vmem:[%s729_s26 + $0xd0] sm:$0xff] %v376_v48  ;;  %431 = vst [vmem:[%s729_s26 + $0xd8] sm:$0xff] %v377_v49  ;;  %v599_v60 = vunpack.c.l.bf16 %v650_v50  ;;  %v600_v61 = vunpack.c.h.bf16 %v650_v50  ;;  %v603_v62 = vunpack.c.l.bf16 %v651_v51  ;;  %v604_v63 = vunpack.c.h.bf16 %v651_v51 }
  0x2b   : > { %432 = vst [vmem:[%s729_s26 + $0xe0] sm:$0xff] %v378_v52  ;;  %433 = vst [vmem:[%s729_s26 + $0xe8] sm:$0xff] %v379_v53  ;;  %v321_v1 = vmul.f32 %v591_v56, %v711_v0  ;;  %v322_v2 = vmul.f32 %v592_v57, %v711_v0  ;;  %v323_v3 = vmul.f32 %v595_v58, %v711_v0  ;;  %v607_v22 = vunpack.c.l.bf16 %v652_v10 }
  0x2c   : > { %434 = vst [vmem:[%s729_s26 + $0xf0] sm:$0xff] %v380_v54  ;;  %435 = vst [vmem:[%s729_s26 + $0xf8] sm:$0xff] %v381_v55  ;;  %v324_v4 = vmul.f32 %v596_v59, %v711_v0  ;;  %v325_v5 = vmul.f32 %v599_v60, %v711_v0  ;;  %v326_v6 = vmul.f32 %v600_v61, %v711_v0  ;;  %v608_v23 = vunpack.c.h.bf16 %v652_v10 }
  0x2d   : > { %v327_v7 = vmul.f32 %v603_v62, %v711_v0  ;;  %v328_v8 = vmul.f32 %v604_v63, %v711_v0  ;;  %v382_v12 = vadd.f32 %v720_v9, %v321_v1  ;;  %v383_v13 = vadd.f32 %v720_v9, %v322_v2 }
  0x2e   : > { %v384_v14 = vadd.f32 %v720_v9, %v323_v3  ;;  %v385_v15 = vadd.f32 %v720_v9, %v324_v4  ;;  %v386_v18 = vadd.f32 %v720_v9, %v325_v5  ;;  %v387_v19 = vadd.f32 %v720_v9, %v326_v6 }
  0x2f   : > { %v388_v20 = vadd.f32 %v720_v9, %v327_v7  ;;  %v389_v21 = vadd.f32 %v720_v9, %v328_v8  ;;  %436 = vst [vmem:[%s729_s26 + $0x100] sm:$0xff] %v382_v12  ;;  %437 = vst [vmem:[%s729_s26 + $0x108] sm:$0xff] %v383_v13  ;;  %v611_v24 = vunpack.c.l.bf16 %v653_v11  ;;  %v612_v25 = vunpack.c.h.bf16 %v653_v11 }
  0x30   : > { %438 = vst [vmem:[%s729_s26 + $0x110] sm:$0xff] %v384_v14  ;;  %439 = vst [vmem:[%s729_s26 + $0x118] sm:$0xff] %v385_v15  ;;  %v615_v26 = vunpack.c.l.bf16 %v654_v16  ;;  %v616_v27 = vunpack.c.h.bf16 %v654_v16  ;;  %v619_v28 = vunpack.c.l.bf16 %v655_v17  ;;  %v620_v29 = vunpack.c.h.bf16 %v655_v17 }
  0x31   : > { %440 = vst [vmem:[%s729_s26 + $0x120] sm:$0xff] %v386_v18  ;;  %441 = vst [vmem:[%s729_s26 + $0x128] sm:$0xff] %v387_v19  ;;  %v329_v30 = vmul.f32 %v607_v22, %v711_v0  ;;  %v330_v31 = vmul.f32 %v608_v23, %v711_v0  ;;  %v331_v32 = vmul.f32 %v611_v24, %v711_v0  ;;  %v623_v49 = vunpack.c.l.bf16 %v656_v38 }
  0x32   : > { %442 = vst [vmem:[%s729_s26 + $0x130] sm:$0xff] %v388_v20  ;;  %443 = vst [vmem:[%s729_s26 + $0x138] sm:$0xff] %v389_v21  ;;  %v332_v33 = vmul.f32 %v612_v25, %v711_v0  ;;  %v333_v34 = vmul.f32 %v615_v26, %v711_v0  ;;  %v334_v35 = vmul.f32 %v616_v27, %v711_v0  ;;  %v624_v50 = vunpack.c.h.bf16 %v656_v38 }
  0x33   : > { %v335_v36 = vmul.f32 %v619_v28, %v711_v0  ;;  %v336_v37 = vmul.f32 %v620_v29, %v711_v0  ;;  %v390_v40 = vadd.f32 %v720_v9, %v329_v30  ;;  %v391_v41 = vadd.f32 %v720_v9, %v330_v31 }
  0x34   : > { %v392_v42 = vadd.f32 %v720_v9, %v331_v32  ;;  %v393_v43 = vadd.f32 %v720_v9, %v332_v33  ;;  %v394_v45 = vadd.f32 %v720_v9, %v333_v34  ;;  %v395_v46 = vadd.f32 %v720_v9, %v334_v35 }
  0x35   : > { %v396_v47 = vadd.f32 %v720_v9, %v335_v36  ;;  %v397_v48 = vadd.f32 %v720_v9, %v336_v37  ;;  %444 = vst [vmem:[%s729_s26 + $0x140] sm:$0xff] %v390_v40  ;;  %445 = vst [vmem:[%s729_s26 + $0x148] sm:$0xff] %v391_v41  ;;  %v627_v51 = vunpack.c.l.bf16 %v657_v39  ;;  %v628_v52 = vunpack.c.h.bf16 %v657_v39 }
  0x36   : > { %446 = vst [vmem:[%s729_s26 + $0x150] sm:$0xff] %v392_v42  ;;  %447 = vst [vmem:[%s729_s26 + $0x158] sm:$0xff] %v393_v43  ;;  %v631_v53 = vunpack.c.l.bf16 %v658_v44  ;;  %v632_v54 = vunpack.c.h.bf16 %v658_v44  ;;  %v337_v55 = vmul.f32 %v623_v49, %v711_v0  ;;  %v338_v56 = vmul.f32 %v624_v50, %v711_v0 }
  0x37   : > { %448 = vst [vmem:[%s729_s26 + $0x160] sm:$0xff] %v394_v45  ;;  %449 = vst [vmem:[%s729_s26 + $0x168] sm:$0xff] %v395_v46  ;;  %v339_v57 = vmul.f32 %v627_v51, %v711_v0  ;;  %v340_v58 = vmul.f32 %v628_v52, %v711_v0 }
  0x38   : > { %450 = vst [vmem:[%s729_s26 + $0x170] sm:$0xff] %v396_v47  ;;  %451 = vst [vmem:[%s729_s26 + $0x178] sm:$0xff] %v397_v48  ;;  %v341_v59 = vmul.f32 %v631_v53, %v711_v0  ;;  %v342_v60 = vmul.f32 %v632_v54, %v711_v0  ;;  %v398_v61 = vadd.f32 %v720_v9, %v337_v55 }
  0x39   : > { %v399_v62 = vadd.f32 %v720_v9, %v338_v56  ;;  %v400_v63 = vadd.f32 %v720_v9, %v339_v57  ;;  %v401_v1 = vadd.f32 %v720_v9, %v340_v58 }
  0x3a   : > { %v402_v2 = vadd.f32 %v720_v9, %v341_v59  ;;  %v403_v3 = vadd.f32 %v720_v9, %v342_v60  ;;  %452 = vst [vmem:[%s729_s26 + $0x180] sm:$0xff] %v398_v61 }
  0x3b   : > { %453 = vst [vmem:[%s729_s26 + $0x188] sm:$0xff] %v399_v62  ;;  %454 = vst [vmem:[%s729_s26 + $0x190] sm:$0xff] %v400_v63 }
  0x3c   : > { %455 = vst [vmem:[%s729_s26 + $0x198] sm:$0xff] %v401_v1  ;;  %456 = vst [vmem:[%s729_s26 + $0x1a0] sm:$0xff] %v402_v2 }
  0x3d   : > { %457 = vst [vmem:[%s729_s26 + $0x1a8] sm:$0xff] %v403_v3 }
  0x3e PF: > { %s13_s12 = sadd.s32 1, %s673_s12  }
  0x3f   : > { %p10_p4 = scmp.ge.s32.totalorder %s13_s12, 6  }
  0x41   :  { %12 = sbr.rel (!%p10_p4) target bundleno = 1 (0x1), region = 62 }

</bundles_post_ra>
